<compile_context>
chip_gen: v5e
topology: v5e:2x2
jax: 0.10.0
libtpu: 0.0.40
codegen_flags: <defaults>
</compile_context>

<pallas_src>
import functools

import jax
import jax.numpy as jnp
from jax.experimental import pallas as pl
from jax.experimental.pallas import tpu as pltpu


def encoder_kernel(x_ref, wih_ref, bih_ref, whh_ref, bhh_ref,
                   wout_ref, bout_ref, out_ref):
    """GRU layer-0 recurrence + fused mu/log_sigma2 head.

    x_ref   : (T, B, D)   time-major input (== x.permute(1, 0, 2))
    wih_ref : (D, 3G)     input->gate weights, gate g in lanes [g*G, g*G+H)
    bih_ref : (1, 3G)
    whh_ref : (G, 3G)     hidden->gate weights, rows >= H zero-padded
    bhh_ref : (1, 3G)
    wout_ref: (G, G)      [w_mu.T | w_ls.T | 0] fused head, lane-dense
    bout_ref: (1, G)
    out_ref : (B, G)      [mu | log_sigma2 | 0]
    """
    T, B, _ = x_ref.shape
    G = whh_ref.shape[1] // 3          # 128-lane block per gate

    # Small operands hoisted as resident values (wih = 6 vregs, biases a few).
    wih = wih_ref[...]                 # (D, 3G)
    bih = bih_ref[...]                 # (1, 3G)
    bhh = bhh_ref[...]                 # (1, 3G)

    # Padded lanes [H, G) of h stay exactly 0 for all t (gi/gh pad lanes are 0
    # -> r=z=0.5, n=0 there), and whh's padded rows are zero, so padding can
    # never leak into real lanes.
    h = jnp.zeros((B, G), jnp.float32)

    # T is static -> fully unrolled recurrence.  The gi_t matmuls do not depend
    # on h, so the LLO scheduler hoists/overlaps them off the serial chain; only
    # the gh matmul + activations + h update are on the critical path.
    for t in range(T):
        gi_t = jnp.dot(x_ref[t], wih, preferred_element_type=jnp.float32) + bih
        # whh is (128, 384) f32 = 48 vregs: do NOT hoist into a value; stream it
        # from VMEM inside the dot each step (3 vld slots/cycle are free here).
        gh = jnp.dot(h, whh_ref[...], preferred_element_type=jnp.float32) + bhh
        # r|z fused into ONE EUP push; sigmoid via the exact tanh identity
        # 0.5*tanh(0.5*x)+0.5 avoids the logistic's VPU divide (v5e especially).
        rz = 0.5 * jnp.tanh(0.5 * (gi_t[:, :2 * G] + gh[:, :2 * G])) + 0.5
        r = rz[:, :G]
        z = rz[:, G:]
        # PyTorch GRU: n = tanh(W_in x + b_in + r * (W_hn h + b_hn))
        n = jnp.tanh(gi_t[:, 2 * G:] + r * gh[:, 2 * G:])
        h = (1.0 - z) * n + z * h

    # h == h_n[0] (first-layer final hidden state; PyTorch unpack quirk).
    # Lane-dense (B, 128) store; wrapper slices [:, :2L].
    out_ref[...] = (jnp.dot(h, wout_ref[...], preferred_element_type=jnp.float32)
                    + bout_ref[...])


def init_params(key, input_dim, hidden_size, latent_length):
    """PyTorch-layout parameters, uniform(-1/sqrt(H), 1/sqrt(H)).

    Layer-1 GRU weights exist in the PyTorch module but never influence the
    output (h_end = h_n[0]), so they are omitted.
    """
    H, D, L = hidden_size, input_dim, latent_length
    s = 1.0 / jnp.sqrt(jnp.float32(H))
    ks = jax.random.split(key, 8)
    u = lambda k, shape: jax.random.uniform(k, shape, jnp.float32, -s, s)
    return dict(
        w_ih_l0=u(ks[0], (3 * H, D)),   # gate rows stacked r|z|n (PyTorch order)
        w_hh_l0=u(ks[1], (3 * H, H)),
        b_ih_l0=u(ks[2], (3 * H,)),
        b_hh_l0=u(ks[3], (3 * H,)),
        w_mu=u(ks[4], (L, H)), b_mu=u(ks[5], (L,)),
        w_ls=u(ks[6], (L, H)), b_ls=u(ks[7], (L,)),
    )


def pack_params(params, lane_block=128):
    """PyTorch layout -> kernel layout.  Call ONCE at model-load time.

    Per-call cost is zero: the packed arrays are passed straight into
    encoder_forward, so no transpose/concat/pad ops run per inference call.
    Gate g occupies lanes [g*G, g*G+H) of a G=128-lane block (zero-padded), so
    gate extraction in the kernel is whole-vreg lane slicing.
    """
    G = lane_block
    w_ih = params["w_ih_l0"]                         # (3H, D)
    w_hh = params["w_hh_l0"]                         # (3H, H)
    H = w_hh.shape[1]
    D = w_ih.shape[1]
    L = params["w_mu"].shape[0]
    assert H <= G and 2 * L <= G, "hidden/latent exceed one 128-lane block"

    wih = jnp.zeros((D, 3 * G), jnp.float32)
    whh = jnp.zeros((G, 3 * G), jnp.float32)         # rows >= H stay zero
    bih = jnp.zeros((1, 3 * G), jnp.float32)
    bhh = jnp.zeros((1, 3 * G), jnp.float32)
    for g in range(3):                               # gate order r|z|n (PyTorch)
        wih = wih.at[:, g * G:g * G + H].set(w_ih[g * H:(g + 1) * H, :].T)
        whh = whh.at[:H, g * G:g * G + H].set(w_hh[g * H:(g + 1) * H, :].T)
        bih = bih.at[0, g * G:g * G + H].set(params["b_ih_l0"][g * H:(g + 1) * H])
        bhh = bhh.at[0, g * G:g * G + H].set(params["b_hh_l0"][g * H:(g + 1) * H])

    # Fused, lane-dense output head: [mu | log_sigma2 | 0] on 128 lanes.
    wout = jnp.zeros((G, G), jnp.float32)
    wout = wout.at[:H, :L].set(params["w_mu"].T)
    wout = wout.at[:H, L:2 * L].set(params["w_ls"].T)
    bout = jnp.zeros((1, G), jnp.float32)
    bout = bout.at[0, :L].set(params["b_mu"])
    bout = bout.at[0, L:2 * L].set(params["b_ls"])
    return wih, bih, whh, bhh, wout, bout


@functools.partial(jax.jit, static_argnames=("latent_length",))
def encoder_forward(x, packed, *, latent_length):
    """x: (batch, seq, input_dim) f32 -> (mu, log_sigma2), each (batch, L)."""
    wih, bih, whh, bhh, wout, bout = packed
    B, T, D = x.shape
    G = wout.shape[1]

    # The only x-side wrapper op: a single tiny fused transpose to time-major
    # (== x.permute(1, 0, 2)).  No pad / reshape round-trips; per-step indexing
    # happens inside the kernel via x_ref[t].
    x_tm = jnp.transpose(x, (1, 0, 2))               # (T, B, D)

    vmem = pl.BlockSpec(memory_space=pltpu.MemorySpace.VMEM)
    # Gridless: total residency (x + packed weights) < 0.5 MiB, far below every
    # generation's scoped-VMEM default (16 MiB v5e, 32 MiB v6e/v7x), so no
    # vmem_limit_bytes is needed.  If batch grows, add a grid over B with
    # dimension_semantics=("parallel",) to engage the 2nd TensorCore on v7x;
    # if T*B*D grows, add a grid over T ("arbitrary") carrying h in a VMEM
    # scratch and set vmem_limit_bytes explicitly (use ~half the v6e tile on
    # v7x's 64 MiB VMEM).
    out = pl.pallas_call(
        encoder_kernel,
        out_shape=jax.ShapeDtypeStruct((B, G), jnp.float32),
        in_specs=[vmem] * 7,
        out_specs=vmem,
    )(x_tm, wih, bih, whh, bhh, wout, bout)

    mu = out[:, :latent_length]
    log_sigma2 = out[:, latent_length:2 * latent_length]
    return mu, log_sigma2


def _reference_forward(x, params):
    """Pure-JAX reference with PyTorch GRU math (layer 0 only, h_end = h_n[0])."""
    w_ih, w_hh = params["w_ih_l0"], params["w_hh_l0"]
    b_ih, b_hh = params["b_ih_l0"], params["b_hh_l0"]
    H = w_hh.shape[1]
    B, T, _ = x.shape
    x_tm = jnp.transpose(x, (1, 0, 2))
    h = jnp.zeros((B, H), jnp.float32)
    for t in range(T):
        gi = x_tm[t] @ w_ih.T + b_ih
        gh = h @ w_hh.T + b_hh
        r = jax.nn.sigmoid(gi[:, :H] + gh[:, :H])
        z = jax.nn.sigmoid(gi[:, H:2 * H] + gh[:, H:2 * H])
        n = jnp.tanh(gi[:, 2 * H:] + r * gh[:, 2 * H:])
        h = (1.0 - z) * n + z * h
    mu = h @ params["w_mu"].T + params["b_mu"]
    ls = h @ params["w_ls"].T + params["b_ls"]
    return mu, ls


if __name__ == "__main__":
    # Small shapes consistent with the module's forward:
    #   x: (batch=2, seq=8, input_dim=16), hidden_size=32, latent_length=4.
    B, T, D, H, L = 2, 8, 16, 32, 4

    key = jax.random.PRNGKey(0)
    k_x, k_p = jax.random.split(key)
    x = jax.random.normal(k_x, (B, T, D), jnp.float32)
    params = init_params(k_p, input_dim=D, hidden_size=H, latent_length=L)

    # Pack weights ONCE at "model-load" time (out of the per-call jitted path).
    packed = pack_params(params)

    mu, log_sigma2 = encoder_forward(x, packed, latent_length=L)
    jax.block_until_ready((mu, log_sigma2))

    mu_ref, ls_ref = _reference_forward(x, params)
    assert mu.shape == (B, L) and log_sigma2.shape == (B, L)
    assert jnp.allclose(mu, mu_ref, atol=1e-4), "mu mismatch vs reference"
    assert jnp.allclose(log_sigma2, ls_ref, atol=1e-4), "log_sigma2 mismatch"

    # TODO(synk): nn.GRU dropout=0.3 applies only in training mode between
    # layers; this kernel implements inference (dropout inactive).
    print("KERNEL_OK")
</pallas_src>

<mosaic_0001>
module attributes {stable_mosaic.version = 11 : i64} {
  func.func @encoder_kernel(%arg0: memref<8x2x16xf32, #tpu.memory_space<vmem>>, %arg1: memref<16x384xf32, #tpu.memory_space<vmem>>, %arg2: memref<1x384xf32, #tpu.memory_space<vmem>>, %arg3: memref<128x384xf32, #tpu.memory_space<vmem>>, %arg4: memref<1x384xf32, #tpu.memory_space<vmem>>, %arg5: memref<128x128xf32, #tpu.memory_space<vmem>>, %arg6: memref<1x128xf32, #tpu.memory_space<vmem>>, %arg7: memref<2x128xf32, #tpu.memory_space<vmem>>) attributes {dimension_semantics = [], scalar_prefetch = 0 : i64, scratch_operands = 0 : i64, tpu.core_type = #tpu.core_type<tc>} {
    %c0 = arith.constant 0 : index
    %c0_0 = arith.constant 0 : index
    %0 = vector.load %arg1[%c0, %c0_0] : memref<16x384xf32, #tpu.memory_space<vmem>>, vector<16x384xf32>
    %c0_1 = arith.constant 0 : index
    %c0_2 = arith.constant 0 : index
    %1 = vector.load %arg2[%c0_1, %c0_2] : memref<1x384xf32, #tpu.memory_space<vmem>>, vector<1x384xf32>
    %c0_3 = arith.constant 0 : index
    %c0_4 = arith.constant 0 : index
    %2 = vector.load %arg4[%c0_3, %c0_4] : memref<1x384xf32, #tpu.memory_space<vmem>>, vector<1x384xf32>
    %cst = arith.constant 0.000000e+00 : f32
    %3 = vector.broadcast %cst : f32 to vector<2x128xf32>
    %c0_5 = arith.constant 0 : index
    %c0_6 = arith.constant 0 : index
    %c0_7 = arith.constant 0 : index
    %4 = vector.load %arg0[%c0_5, %c0_6, %c0_7] : memref<8x2x16xf32, #tpu.memory_space<vmem>>, vector<1x2x16xf32>
    %5 = vector.shape_cast %4 : vector<1x2x16xf32> to vector<2x16xf32>
    %cst_8 = arith.constant dense<0.000000e+00> : vector<2x384xf32>
    %6 = tpu.matmul %5, %0, %cst_8 {dimension_numbers = #tpu.dot_dimension_numbers<[1], [0], [0], [1], [0, 0, 1, 1], [], []>} : vector<2x16xf32>, vector<16x384xf32>, vector<2x384xf32> -> vector<2x384xf32>
    %7 = vector.broadcast %1 : vector<1x384xf32> to vector<2x384xf32>
    %8 = arith.addf %6, %7 : vector<2x384xf32>
    %c0_9 = arith.constant 0 : index
    %c0_10 = arith.constant 0 : index
    %9 = vector.load %arg3[%c0_9, %c0_10] : memref<128x384xf32, #tpu.memory_space<vmem>>, vector<128x384xf32>
    %cst_11 = arith.constant dense<0.000000e+00> : vector<2x384xf32>
    %10 = tpu.matmul %3, %9, %cst_11 {dimension_numbers = #tpu.dot_dimension_numbers<[1], [0], [0], [1], [0, 0, 1, 1], [], []>} : vector<2x128xf32>, vector<128x384xf32>, vector<2x384xf32> -> vector<2x384xf32>
    %11 = vector.broadcast %2 : vector<1x384xf32> to vector<2x384xf32>
    %12 = arith.addf %10, %11 : vector<2x384xf32>
    %13 = vector.extract_strided_slice %8 {offsets = [0, 0], sizes = [2, 256], strides = [1, 1]} : vector<2x384xf32> to vector<2x256xf32>
    %14 = vector.extract_strided_slice %12 {offsets = [0, 0], sizes = [2, 256], strides = [1, 1]} : vector<2x384xf32> to vector<2x256xf32>
    %15 = arith.addf %13, %14 : vector<2x256xf32>
    %cst_12 = arith.constant 5.000000e-01 : f32
    %16 = vector.broadcast %cst_12 : f32 to vector<2x256xf32>
    %17 = arith.mulf %16, %15 : vector<2x256xf32>
    %18 = math.tanh %17 : vector<2x256xf32>
    %cst_13 = arith.constant 5.000000e-01 : f32
    %19 = vector.broadcast %cst_13 : f32 to vector<2x256xf32>
    %20 = arith.mulf %19, %18 : vector<2x256xf32>
    %cst_14 = arith.constant 5.000000e-01 : f32
    %21 = vector.broadcast %cst_14 : f32 to vector<2x256xf32>
    %22 = arith.addf %20, %21 : vector<2x256xf32>
    %23 = vector.extract_strided_slice %22 {offsets = [0, 0], sizes = [2, 128], strides = [1, 1]} : vector<2x256xf32> to vector<2x128xf32>
    %24 = vector.extract_strided_slice %22 {offsets = [0, 128], sizes = [2, 128], strides = [1, 1]} : vector<2x256xf32> to vector<2x128xf32>
    %25 = vector.extract_strided_slice %8 {offsets = [0, 256], sizes = [2, 128], strides = [1, 1]} : vector<2x384xf32> to vector<2x128xf32>
    %26 = vector.extract_strided_slice %12 {offsets = [0, 256], sizes = [2, 128], strides = [1, 1]} : vector<2x384xf32> to vector<2x128xf32>
    %27 = arith.mulf %23, %26 : vector<2x128xf32>
    %28 = arith.addf %25, %27 : vector<2x128xf32>
    %29 = math.tanh %28 : vector<2x128xf32>
    %cst_15 = arith.constant 1.000000e+00 : f32
    %30 = vector.broadcast %cst_15 : f32 to vector<2x128xf32>
    %31 = arith.subf %30, %24 : vector<2x128xf32>
    %32 = arith.mulf %31, %29 : vector<2x128xf32>
    %33 = arith.mulf %24, %3 : vector<2x128xf32>
    %34 = arith.addf %32, %33 : vector<2x128xf32>
    %c1 = arith.constant 1 : index
    %c0_16 = arith.constant 0 : index
    %c0_17 = arith.constant 0 : index
    %35 = vector.load %arg0[%c1, %c0_16, %c0_17] : memref<8x2x16xf32, #tpu.memory_space<vmem>>, vector<1x2x16xf32>
    %36 = vector.shape_cast %35 : vector<1x2x16xf32> to vector<2x16xf32>
    %cst_18 = arith.constant dense<0.000000e+00> : vector<2x384xf32>
    %37 = tpu.matmul %36, %0, %cst_18 {dimension_numbers = #tpu.dot_dimension_numbers<[1], [0], [0], [1], [0, 0, 1, 1], [], []>} : vector<2x16xf32>, vector<16x384xf32>, vector<2x384xf32> -> vector<2x384xf32>
    %38 = vector.broadcast %1 : vector<1x384xf32> to vector<2x384xf32>
    %39 = arith.addf %37, %38 : vector<2x384xf32>
    %c0_19 = arith.constant 0 : index
    %c0_20 = arith.constant 0 : index
    %40 = vector.load %arg3[%c0_19, %c0_20] : memref<128x384xf32, #tpu.memory_space<vmem>>, vector<128x384xf32>
    %cst_21 = arith.constant dense<0.000000e+00> : vector<2x384xf32>
    %41 = tpu.matmul %34, %40, %cst_21 {dimension_numbers = #tpu.dot_dimension_numbers<[1], [0], [0], [1], [0, 0, 1, 1], [], []>} : vector<2x128xf32>, vector<128x384xf32>, vector<2x384xf32> -> vector<2x384xf32>
    %42 = vector.broadcast %2 : vector<1x384xf32> to vector<2x384xf32>
    %43 = arith.addf %41, %42 : vector<2x384xf32>
    %44 = vector.extract_strided_slice %39 {offsets = [0, 0], sizes = [2, 256], strides = [1, 1]} : vector<2x384xf32> to vector<2x256xf32>
    %45 = vector.extract_strided_slice %43 {offsets = [0, 0], sizes = [2, 256], strides = [1, 1]} : vector<2x384xf32> to vector<2x256xf32>
    %46 = arith.addf %44, %45 : vector<2x256xf32>
    %cst_22 = arith.constant 5.000000e-01 : f32
    %47 = vector.broadcast %cst_22 : f32 to vector<2x256xf32>
    %48 = arith.mulf %47, %46 : vector<2x256xf32>
    %49 = math.tanh %48 : vector<2x256xf32>
    %cst_23 = arith.constant 5.000000e-01 : f32
    %50 = vector.broadcast %cst_23 : f32 to vector<2x256xf32>
    %51 = arith.mulf %50, %49 : vector<2x256xf32>
    %cst_24 = arith.constant 5.000000e-01 : f32
    %52 = vector.broadcast %cst_24 : f32 to vector<2x256xf32>
    %53 = arith.addf %51, %52 : vector<2x256xf32>
    %54 = vector.extract_strided_slice %53 {offsets = [0, 0], sizes = [2, 128], strides = [1, 1]} : vector<2x256xf32> to vector<2x128xf32>
    %55 = vector.extract_strided_slice %53 {offsets = [0, 128], sizes = [2, 128], strides = [1, 1]} : vector<2x256xf32> to vector<2x128xf32>
    %56 = vector.extract_strided_slice %39 {offsets = [0, 256], sizes = [2, 128], strides = [1, 1]} : vector<2x384xf32> to vector<2x128xf32>
    %57 = vector.extract_strided_slice %43 {offsets = [0, 256], sizes = [2, 128], strides = [1, 1]} : vector<2x384xf32> to vector<2x128xf32>
    %58 = arith.mulf %54, %57 : vector<2x128xf32>
    %59 = arith.addf %56, %58 : vector<2x128xf32>
    %60 = math.tanh %59 : vector<2x128xf32>
    %cst_25 = arith.constant 1.000000e+00 : f32
    %61 = vector.broadcast %cst_25 : f32 to vector<2x128xf32>
    %62 = arith.subf %61, %55 : vector<2x128xf32>
    %63 = arith.mulf %62, %60 : vector<2x128xf32>
    %64 = arith.mulf %55, %34 : vector<2x128xf32>
    %65 = arith.addf %63, %64 : vector<2x128xf32>
    %c2 = arith.constant 2 : index
    %c0_26 = arith.constant 0 : index
    %c0_27 = arith.constant 0 : index
    %66 = vector.load %arg0[%c2, %c0_26, %c0_27] : memref<8x2x16xf32, #tpu.memory_space<vmem>>, vector<1x2x16xf32>
    %67 = vector.shape_cast %66 : vector<1x2x16xf32> to vector<2x16xf32>
    %cst_28 = arith.constant dense<0.000000e+00> : vector<2x384xf32>
    %68 = tpu.matmul %67, %0, %cst_28 {dimension_numbers = #tpu.dot_dimension_numbers<[1], [0], [0], [1], [0, 0, 1, 1], [], []>} : vector<2x16xf32>, vector<16x384xf32>, vector<2x384xf32> -> vector<2x384xf32>
    %69 = vector.broadcast %1 : vector<1x384xf32> to vector<2x384xf32>
    %70 = arith.addf %68, %69 : vector<2x384xf32>
    %c0_29 = arith.constant 0 : index
    %c0_30 = arith.constant 0 : index
    %71 = vector.load %arg3[%c0_29, %c0_30] : memref<128x384xf32, #tpu.memory_space<vmem>>, vector<128x384xf32>
    %cst_31 = arith.constant dense<0.000000e+00> : vector<2x384xf32>
    %72 = tpu.matmul %65, %71, %cst_31 {dimension_numbers = #tpu.dot_dimension_numbers<[1], [0], [0], [1], [0, 0, 1, 1], [], []>} : vector<2x128xf32>, vector<128x384xf32>, vector<2x384xf32> -> vector<2x384xf32>
    %73 = vector.broadcast %2 : vector<1x384xf32> to vector<2x384xf32>
    %74 = arith.addf %72, %73 : vector<2x384xf32>
    %75 = vector.extract_strided_slice %70 {offsets = [0, 0], sizes = [2, 256], strides = [1, 1]} : vector<2x384xf32> to vector<2x256xf32>
    %76 = vector.extract_strided_slice %74 {offsets = [0, 0], sizes = [2, 256], strides = [1, 1]} : vector<2x384xf32> to vector<2x256xf32>
    %77 = arith.addf %75, %76 : vector<2x256xf32>
    %cst_32 = arith.constant 5.000000e-01 : f32
    %78 = vector.broadcast %cst_32 : f32 to vector<2x256xf32>
    %79 = arith.mulf %78, %77 : vector<2x256xf32>
    %80 = math.tanh %79 : vector<2x256xf32>
    %cst_33 = arith.constant 5.000000e-01 : f32
    %81 = vector.broadcast %cst_33 : f32 to vector<2x256xf32>
    %82 = arith.mulf %81, %80 : vector<2x256xf32>
    %cst_34 = arith.constant 5.000000e-01 : f32
    %83 = vector.broadcast %cst_34 : f32 to vector<2x256xf32>
    %84 = arith.addf %82, %83 : vector<2x256xf32>
    %85 = vector.extract_strided_slice %84 {offsets = [0, 0], sizes = [2, 128], strides = [1, 1]} : vector<2x256xf32> to vector<2x128xf32>
    %86 = vector.extract_strided_slice %84 {offsets = [0, 128], sizes = [2, 128], strides = [1, 1]} : vector<2x256xf32> to vector<2x128xf32>
    %87 = vector.extract_strided_slice %70 {offsets = [0, 256], sizes = [2, 128], strides = [1, 1]} : vector<2x384xf32> to vector<2x128xf32>
    %88 = vector.extract_strided_slice %74 {offsets = [0, 256], sizes = [2, 128], strides = [1, 1]} : vector<2x384xf32> to vector<2x128xf32>
    %89 = arith.mulf %85, %88 : vector<2x128xf32>
    %90 = arith.addf %87, %89 : vector<2x128xf32>
    %91 = math.tanh %90 : vector<2x128xf32>
    %cst_35 = arith.constant 1.000000e+00 : f32
    %92 = vector.broadcast %cst_35 : f32 to vector<2x128xf32>
    %93 = arith.subf %92, %86 : vector<2x128xf32>
    %94 = arith.mulf %93, %91 : vector<2x128xf32>
    %95 = arith.mulf %86, %65 : vector<2x128xf32>
    %96 = arith.addf %94, %95 : vector<2x128xf32>
    %c3 = arith.constant 3 : index
    %c0_36 = arith.constant 0 : index
    %c0_37 = arith.constant 0 : index
    %97 = vector.load %arg0[%c3, %c0_36, %c0_37] : memref<8x2x16xf32, #tpu.memory_space<vmem>>, vector<1x2x16xf32>
    %98 = vector.shape_cast %97 : vector<1x2x16xf32> to vector<2x16xf32>
    %cst_38 = arith.constant dense<0.000000e+00> : vector<2x384xf32>
    %99 = tpu.matmul %98, %0, %cst_38 {dimension_numbers = #tpu.dot_dimension_numbers<[1], [0], [0], [1], [0, 0, 1, 1], [], []>} : vector<2x16xf32>, vector<16x384xf32>, vector<2x384xf32> -> vector<2x384xf32>
    %100 = vector.broadcast %1 : vector<1x384xf32> to vector<2x384xf32>
    %101 = arith.addf %99, %100 : vector<2x384xf32>
    %c0_39 = arith.constant 0 : index
    %c0_40 = arith.constant 0 : index
    %102 = vector.load %arg3[%c0_39, %c0_40] : memref<128x384xf32, #tpu.memory_space<vmem>>, vector<128x384xf32>
    %cst_41 = arith.constant dense<0.000000e+00> : vector<2x384xf32>
    %103 = tpu.matmul %96, %102, %cst_41 {dimension_numbers = #tpu.dot_dimension_numbers<[1], [0], [0], [1], [0, 0, 1, 1], [], []>} : vector<2x128xf32>, vector<128x384xf32>, vector<2x384xf32> -> vector<2x384xf32>
    %104 = vector.broadcast %2 : vector<1x384xf32> to vector<2x384xf32>
    %105 = arith.addf %103, %104 : vector<2x384xf32>
    %106 = vector.extract_strided_slice %101 {offsets = [0, 0], sizes = [2, 256], strides = [1, 1]} : vector<2x384xf32> to vector<2x256xf32>
    %107 = vector.extract_strided_slice %105 {offsets = [0, 0], sizes = [2, 256], strides = [1, 1]} : vector<2x384xf32> to vector<2x256xf32>
    %108 = arith.addf %106, %107 : vector<2x256xf32>
    %cst_42 = arith.constant 5.000000e-01 : f32
    %109 = vector.broadcast %cst_42 : f32 to vector<2x256xf32>
    %110 = arith.mulf %109, %108 : vector<2x256xf32>
    %111 = math.tanh %110 : vector<2x256xf32>
    %cst_43 = arith.constant 5.000000e-01 : f32
    %112 = vector.broadcast %cst_43 : f32 to vector<2x256xf32>
    %113 = arith.mulf %112, %111 : vector<2x256xf32>
    %cst_44 = arith.constant 5.000000e-01 : f32
    %114 = vector.broadcast %cst_44 : f32 to vector<2x256xf32>
    %115 = arith.addf %113, %114 : vector<2x256xf32>
    %116 = vector.extract_strided_slice %115 {offsets = [0, 0], sizes = [2, 128], strides = [1, 1]} : vector<2x256xf32> to vector<2x128xf32>
    %117 = vector.extract_strided_slice %115 {offsets = [0, 128], sizes = [2, 128], strides = [1, 1]} : vector<2x256xf32> to vector<2x128xf32>
    %118 = vector.extract_strided_slice %101 {offsets = [0, 256], sizes = [2, 128], strides = [1, 1]} : vector<2x384xf32> to vector<2x128xf32>
    %119 = vector.extract_strided_slice %105 {offsets = [0, 256], sizes = [2, 128], strides = [1, 1]} : vector<2x384xf32> to vector<2x128xf32>
    %120 = arith.mulf %116, %119 : vector<2x128xf32>
    %121 = arith.addf %118, %120 : vector<2x128xf32>
    %122 = math.tanh %121 : vector<2x128xf32>
    %cst_45 = arith.constant 1.000000e+00 : f32
    %123 = vector.broadcast %cst_45 : f32 to vector<2x128xf32>
    %124 = arith.subf %123, %117 : vector<2x128xf32>
    %125 = arith.mulf %124, %122 : vector<2x128xf32>
    %126 = arith.mulf %117, %96 : vector<2x128xf32>
    %127 = arith.addf %125, %126 : vector<2x128xf32>
    %c4 = arith.constant 4 : index
    %c0_46 = arith.constant 0 : index
    %c0_47 = arith.constant 0 : index
    %128 = vector.load %arg0[%c4, %c0_46, %c0_47] : memref<8x2x16xf32, #tpu.memory_space<vmem>>, vector<1x2x16xf32>
    %129 = vector.shape_cast %128 : vector<1x2x16xf32> to vector<2x16xf32>
    %cst_48 = arith.constant dense<0.000000e+00> : vector<2x384xf32>
    %130 = tpu.matmul %129, %0, %cst_48 {dimension_numbers = #tpu.dot_dimension_numbers<[1], [0], [0], [1], [0, 0, 1, 1], [], []>} : vector<2x16xf32>, vector<16x384xf32>, vector<2x384xf32> -> vector<2x384xf32>
    %131 = vector.broadcast %1 : vector<1x384xf32> to vector<2x384xf32>
    %132 = arith.addf %130, %131 : vector<2x384xf32>
    %c0_49 = arith.constant 0 : index
    %c0_50 = arith.constant 0 : index
    %133 = vector.load %arg3[%c0_49, %c0_50] : memref<128x384xf32, #tpu.memory_space<vmem>>, vector<128x384xf32>
    %cst_51 = arith.constant dense<0.000000e+00> : vector<2x384xf32>
    %134 = tpu.matmul %127, %133, %cst_51 {dimension_numbers = #tpu.dot_dimension_numbers<[1], [0], [0], [1], [0, 0, 1, 1], [], []>} : vector<2x128xf32>, vector<128x384xf32>, vector<2x384xf32> -> vector<2x384xf32>
    %135 = vector.broadcast %2 : vector<1x384xf32> to vector<2x384xf32>
    %136 = arith.addf %134, %135 : vector<2x384xf32>
    %137 = vector.extract_strided_slice %132 {offsets = [0, 0], sizes = [2, 256], strides = [1, 1]} : vector<2x384xf32> to vector<2x256xf32>
    %138 = vector.extract_strided_slice %136 {offsets = [0, 0], sizes = [2, 256], strides = [1, 1]} : vector<2x384xf32> to vector<2x256xf32>
    %139 = arith.addf %137, %138 : vector<2x256xf32>
    %cst_52 = arith.constant 5.000000e-01 : f32
    %140 = vector.broadcast %cst_52 : f32 to vector<2x256xf32>
    %141 = arith.mulf %140, %139 : vector<2x256xf32>
    %142 = math.tanh %141 : vector<2x256xf32>
    %cst_53 = arith.constant 5.000000e-01 : f32
    %143 = vector.broadcast %cst_53 : f32 to vector<2x256xf32>
    %144 = arith.mulf %143, %142 : vector<2x256xf32>
    %cst_54 = arith.constant 5.000000e-01 : f32
    %145 = vector.broadcast %cst_54 : f32 to vector<2x256xf32>
    %146 = arith.addf %144, %145 : vector<2x256xf32>
    %147 = vector.extract_strided_slice %146 {offsets = [0, 0], sizes = [2, 128], strides = [1, 1]} : vector<2x256xf32> to vector<2x128xf32>
    %148 = vector.extract_strided_slice %146 {offsets = [0, 128], sizes = [2, 128], strides = [1, 1]} : vector<2x256xf32> to vector<2x128xf32>
    %149 = vector.extract_strided_slice %132 {offsets = [0, 256], sizes = [2, 128], strides = [1, 1]} : vector<2x384xf32> to vector<2x128xf32>
    %150 = vector.extract_strided_slice %136 {offsets = [0, 256], sizes = [2, 128], strides = [1, 1]} : vector<2x384xf32> to vector<2x128xf32>
    %151 = arith.mulf %147, %150 : vector<2x128xf32>
    %152 = arith.addf %149, %151 : vector<2x128xf32>
    %153 = math.tanh %152 : vector<2x128xf32>
    %cst_55 = arith.constant 1.000000e+00 : f32
    %154 = vector.broadcast %cst_55 : f32 to vector<2x128xf32>
    %155 = arith.subf %154, %148 : vector<2x128xf32>
    %156 = arith.mulf %155, %153 : vector<2x128xf32>
    %157 = arith.mulf %148, %127 : vector<2x128xf32>
    %158 = arith.addf %156, %157 : vector<2x128xf32>
    %c5 = arith.constant 5 : index
    %c0_56 = arith.constant 0 : index
    %c0_57 = arith.constant 0 : index
    %159 = vector.load %arg0[%c5, %c0_56, %c0_57] : memref<8x2x16xf32, #tpu.memory_space<vmem>>, vector<1x2x16xf32>
    %160 = vector.shape_cast %159 : vector<1x2x16xf32> to vector<2x16xf32>
    %cst_58 = arith.constant dense<0.000000e+00> : vector<2x384xf32>
    %161 = tpu.matmul %160, %0, %cst_58 {dimension_numbers = #tpu.dot_dimension_numbers<[1], [0], [0], [1], [0, 0, 1, 1], [], []>} : vector<2x16xf32>, vector<16x384xf32>, vector<2x384xf32> -> vector<2x384xf32>
    %162 = vector.broadcast %1 : vector<1x384xf32> to vector<2x384xf32>
    %163 = arith.addf %161, %162 : vector<2x384xf32>
    %c0_59 = arith.constant 0 : index
    %c0_60 = arith.constant 0 : index
    %164 = vector.load %arg3[%c0_59, %c0_60] : memref<128x384xf32, #tpu.memory_space<vmem>>, vector<128x384xf32>
    %cst_61 = arith.constant dense<0.000000e+00> : vector<2x384xf32>
    %165 = tpu.matmul %158, %164, %cst_61 {dimension_numbers = #tpu.dot_dimension_numbers<[1], [0], [0], [1], [0, 0, 1, 1], [], []>} : vector<2x128xf32>, vector<128x384xf32>, vector<2x384xf32> -> vector<2x384xf32>
    %166 = vector.broadcast %2 : vector<1x384xf32> to vector<2x384xf32>
    %167 = arith.addf %165, %166 : vector<2x384xf32>
    %168 = vector.extract_strided_slice %163 {offsets = [0, 0], sizes = [2, 256], strides = [1, 1]} : vector<2x384xf32> to vector<2x256xf32>
    %169 = vector.extract_strided_slice %167 {offsets = [0, 0], sizes = [2, 256], strides = [1, 1]} : vector<2x384xf32> to vector<2x256xf32>
    %170 = arith.addf %168, %169 : vector<2x256xf32>
    %cst_62 = arith.constant 5.000000e-01 : f32
    %171 = vector.broadcast %cst_62 : f32 to vector<2x256xf32>
    %172 = arith.mulf %171, %170 : vector<2x256xf32>
    %173 = math.tanh %172 : vector<2x256xf32>
    %cst_63 = arith.constant 5.000000e-01 : f32
    %174 = vector.broadcast %cst_63 : f32 to vector<2x256xf32>
    %175 = arith.mulf %174, %173 : vector<2x256xf32>
    %cst_64 = arith.constant 5.000000e-01 : f32
    %176 = vector.broadcast %cst_64 : f32 to vector<2x256xf32>
    %177 = arith.addf %175, %176 : vector<2x256xf32>
    %178 = vector.extract_strided_slice %177 {offsets = [0, 0], sizes = [2, 128], strides = [1, 1]} : vector<2x256xf32> to vector<2x128xf32>
    %179 = vector.extract_strided_slice %177 {offsets = [0, 128], sizes = [2, 128], strides = [1, 1]} : vector<2x256xf32> to vector<2x128xf32>
    %180 = vector.extract_strided_slice %163 {offsets = [0, 256], sizes = [2, 128], strides = [1, 1]} : vector<2x384xf32> to vector<2x128xf32>
    %181 = vector.extract_strided_slice %167 {offsets = [0, 256], sizes = [2, 128], strides = [1, 1]} : vector<2x384xf32> to vector<2x128xf32>
    %182 = arith.mulf %178, %181 : vector<2x128xf32>
    %183 = arith.addf %180, %182 : vector<2x128xf32>
    %184 = math.tanh %183 : vector<2x128xf32>
    %cst_65 = arith.constant 1.000000e+00 : f32
    %185 = vector.broadcast %cst_65 : f32 to vector<2x128xf32>
    %186 = arith.subf %185, %179 : vector<2x128xf32>
    %187 = arith.mulf %186, %184 : vector<2x128xf32>
    %188 = arith.mulf %179, %158 : vector<2x128xf32>
    %189 = arith.addf %187, %188 : vector<2x128xf32>
    %c6 = arith.constant 6 : index
    %c0_66 = arith.constant 0 : index
    %c0_67 = arith.constant 0 : index
    %190 = vector.load %arg0[%c6, %c0_66, %c0_67] : memref<8x2x16xf32, #tpu.memory_space<vmem>>, vector<1x2x16xf32>
    %191 = vector.shape_cast %190 : vector<1x2x16xf32> to vector<2x16xf32>
    %cst_68 = arith.constant dense<0.000000e+00> : vector<2x384xf32>
    %192 = tpu.matmul %191, %0, %cst_68 {dimension_numbers = #tpu.dot_dimension_numbers<[1], [0], [0], [1], [0, 0, 1, 1], [], []>} : vector<2x16xf32>, vector<16x384xf32>, vector<2x384xf32> -> vector<2x384xf32>
    %193 = vector.broadcast %1 : vector<1x384xf32> to vector<2x384xf32>
    %194 = arith.addf %192, %193 : vector<2x384xf32>
    %c0_69 = arith.constant 0 : index
    %c0_70 = arith.constant 0 : index
    %195 = vector.load %arg3[%c0_69, %c0_70] : memref<128x384xf32, #tpu.memory_space<vmem>>, vector<128x384xf32>
    %cst_71 = arith.constant dense<0.000000e+00> : vector<2x384xf32>
    %196 = tpu.matmul %189, %195, %cst_71 {dimension_numbers = #tpu.dot_dimension_numbers<[1], [0], [0], [1], [0, 0, 1, 1], [], []>} : vector<2x128xf32>, vector<128x384xf32>, vector<2x384xf32> -> vector<2x384xf32>
    %197 = vector.broadcast %2 : vector<1x384xf32> to vector<2x384xf32>
    %198 = arith.addf %196, %197 : vector<2x384xf32>
    %199 = vector.extract_strided_slice %194 {offsets = [0, 0], sizes = [2, 256], strides = [1, 1]} : vector<2x384xf32> to vector<2x256xf32>
    %200 = vector.extract_strided_slice %198 {offsets = [0, 0], sizes = [2, 256], strides = [1, 1]} : vector<2x384xf32> to vector<2x256xf32>
    %201 = arith.addf %199, %200 : vector<2x256xf32>
    %cst_72 = arith.constant 5.000000e-01 : f32
    %202 = vector.broadcast %cst_72 : f32 to vector<2x256xf32>
    %203 = arith.mulf %202, %201 : vector<2x256xf32>
    %204 = math.tanh %203 : vector<2x256xf32>
    %cst_73 = arith.constant 5.000000e-01 : f32
    %205 = vector.broadcast %cst_73 : f32 to vector<2x256xf32>
    %206 = arith.mulf %205, %204 : vector<2x256xf32>
    %cst_74 = arith.constant 5.000000e-01 : f32
    %207 = vector.broadcast %cst_74 : f32 to vector<2x256xf32>
    %208 = arith.addf %206, %207 : vector<2x256xf32>
    %209 = vector.extract_strided_slice %208 {offsets = [0, 0], sizes = [2, 128], strides = [1, 1]} : vector<2x256xf32> to vector<2x128xf32>
    %210 = vector.extract_strided_slice %208 {offsets = [0, 128], sizes = [2, 128], strides = [1, 1]} : vector<2x256xf32> to vector<2x128xf32>
    %211 = vector.extract_strided_slice %194 {offsets = [0, 256], sizes = [2, 128], strides = [1, 1]} : vector<2x384xf32> to vector<2x128xf32>
    %212 = vector.extract_strided_slice %198 {offsets = [0, 256], sizes = [2, 128], strides = [1, 1]} : vector<2x384xf32> to vector<2x128xf32>
    %213 = arith.mulf %209, %212 : vector<2x128xf32>
    %214 = arith.addf %211, %213 : vector<2x128xf32>
    %215 = math.tanh %214 : vector<2x128xf32>
    %cst_75 = arith.constant 1.000000e+00 : f32
    %216 = vector.broadcast %cst_75 : f32 to vector<2x128xf32>
    %217 = arith.subf %216, %210 : vector<2x128xf32>
    %218 = arith.mulf %217, %215 : vector<2x128xf32>
    %219 = arith.mulf %210, %189 : vector<2x128xf32>
    %220 = arith.addf %218, %219 : vector<2x128xf32>
    %c7 = arith.constant 7 : index
    %c0_76 = arith.constant 0 : index
    %c0_77 = arith.constant 0 : index
    %221 = vector.load %arg0[%c7, %c0_76, %c0_77] : memref<8x2x16xf32, #tpu.memory_space<vmem>>, vector<1x2x16xf32>
    %222 = vector.shape_cast %221 : vector<1x2x16xf32> to vector<2x16xf32>
    %cst_78 = arith.constant dense<0.000000e+00> : vector<2x384xf32>
    %223 = tpu.matmul %222, %0, %cst_78 {dimension_numbers = #tpu.dot_dimension_numbers<[1], [0], [0], [1], [0, 0, 1, 1], [], []>} : vector<2x16xf32>, vector<16x384xf32>, vector<2x384xf32> -> vector<2x384xf32>
    %224 = vector.broadcast %1 : vector<1x384xf32> to vector<2x384xf32>
    %225 = arith.addf %223, %224 : vector<2x384xf32>
    %c0_79 = arith.constant 0 : index
    %c0_80 = arith.constant 0 : index
    %226 = vector.load %arg3[%c0_79, %c0_80] : memref<128x384xf32, #tpu.memory_space<vmem>>, vector<128x384xf32>
    %cst_81 = arith.constant dense<0.000000e+00> : vector<2x384xf32>
    %227 = tpu.matmul %220, %226, %cst_81 {dimension_numbers = #tpu.dot_dimension_numbers<[1], [0], [0], [1], [0, 0, 1, 1], [], []>} : vector<2x128xf32>, vector<128x384xf32>, vector<2x384xf32> -> vector<2x384xf32>
    %228 = vector.broadcast %2 : vector<1x384xf32> to vector<2x384xf32>
    %229 = arith.addf %227, %228 : vector<2x384xf32>
    %230 = vector.extract_strided_slice %225 {offsets = [0, 0], sizes = [2, 256], strides = [1, 1]} : vector<2x384xf32> to vector<2x256xf32>
    %231 = vector.extract_strided_slice %229 {offsets = [0, 0], sizes = [2, 256], strides = [1, 1]} : vector<2x384xf32> to vector<2x256xf32>
    %232 = arith.addf %230, %231 : vector<2x256xf32>
    %cst_82 = arith.constant 5.000000e-01 : f32
    %233 = vector.broadcast %cst_82 : f32 to vector<2x256xf32>
    %234 = arith.mulf %233, %232 : vector<2x256xf32>
    %235 = math.tanh %234 : vector<2x256xf32>
    %cst_83 = arith.constant 5.000000e-01 : f32
    %236 = vector.broadcast %cst_83 : f32 to vector<2x256xf32>
    %237 = arith.mulf %236, %235 : vector<2x256xf32>
    %cst_84 = arith.constant 5.000000e-01 : f32
    %238 = vector.broadcast %cst_84 : f32 to vector<2x256xf32>
    %239 = arith.addf %237, %238 : vector<2x256xf32>
    %240 = vector.extract_strided_slice %239 {offsets = [0, 0], sizes = [2, 128], strides = [1, 1]} : vector<2x256xf32> to vector<2x128xf32>
    %241 = vector.extract_strided_slice %239 {offsets = [0, 128], sizes = [2, 128], strides = [1, 1]} : vector<2x256xf32> to vector<2x128xf32>
    %242 = vector.extract_strided_slice %225 {offsets = [0, 256], sizes = [2, 128], strides = [1, 1]} : vector<2x384xf32> to vector<2x128xf32>
    %243 = vector.extract_strided_slice %229 {offsets = [0, 256], sizes = [2, 128], strides = [1, 1]} : vector<2x384xf32> to vector<2x128xf32>
    %244 = arith.mulf %240, %243 : vector<2x128xf32>
    %245 = arith.addf %242, %244 : vector<2x128xf32>
    %246 = math.tanh %245 : vector<2x128xf32>
    %cst_85 = arith.constant 1.000000e+00 : f32
    %247 = vector.broadcast %cst_85 : f32 to vector<2x128xf32>
    %248 = arith.subf %247, %241 : vector<2x128xf32>
    %249 = arith.mulf %248, %246 : vector<2x128xf32>
    %250 = arith.mulf %241, %220 : vector<2x128xf32>
    %251 = arith.addf %249, %250 : vector<2x128xf32>
    %c0_86 = arith.constant 0 : index
    %c0_87 = arith.constant 0 : index
    %252 = vector.load %arg5[%c0_86, %c0_87] : memref<128x128xf32, #tpu.memory_space<vmem>>, vector<128x128xf32>
    %cst_88 = arith.constant dense<0.000000e+00> : vector<2x128xf32>
    %253 = tpu.matmul %251, %252, %cst_88 {dimension_numbers = #tpu.dot_dimension_numbers<[1], [0], [0], [1], [0, 0, 1, 1], [], []>} : vector<2x128xf32>, vector<128x128xf32>, vector<2x128xf32> -> vector<2x128xf32>
    %c0_89 = arith.constant 0 : index
    %c0_90 = arith.constant 0 : index
    %254 = vector.load %arg6[%c0_89, %c0_90] : memref<1x128xf32, #tpu.memory_space<vmem>>, vector<1x128xf32>
    %255 = vector.broadcast %254 : vector<1x128xf32> to vector<2x128xf32>
    %256 = arith.addf %253, %255 : vector<2x128xf32>
    %c0_91 = arith.constant 0 : index
    %c0_92 = arith.constant 0 : index
    %257 = vector.load %arg7[%c0_91, %c0_92] : memref<2x128xf32, #tpu.memory_space<vmem>>, vector<2x128xf32>
    tpu.vector_store %arg7[%c0_91, %c0_92], %256 {strides = array<i32>} : memref<2x128xf32, #tpu.memory_space<vmem>>, vector<2x128xf32>,
    return
  }
}

</mosaic_0001>

<bundles_post_ra>
// kernel: encoder_forward.1
= control target key start
LH: loop header
LB: loop body
LE: loop exit
PB: predicated region body
PF: predicated region fallthrough
CT: control target
= control target key end

     0   :  { %12 = vsyncpa [#allocation3], 0  ;;  %s2367_s0 = inlined_call_operand.vmem [shape: f32[8,2,16], index: 0, kind: input, shape index: {}]   ;;  %s2368_s1 = inlined_call_operand.hbm [shape: f32[16,384], index: 1, kind: input, shape index: {}]   ;;  %s2369_s2 = inlined_call_operand.vmem [shape: f32[1,384], index: 2, kind: input, shape index: {}]   ;;  %s2370_s3 = inlined_call_operand.hbm [shape: f32[128,384], index: 3, kind: input, shape index: {}]   ;;  %s2371_s4 = inlined_call_operand.vmem [shape: f32[1,384], index: 4, kind: input, shape index: {}]   ;;  %s2372_s5 = inlined_call_operand.hbm [shape: f32[128,128], index: 5, kind: input, shape index: {}]   ;;  %s2373_s6 = inlined_call_operand.vmem [shape: f32[1,128], index: 6, kind: input, shape index: {}]   ;;  %s2374_s7 = inlined_call_operand.vmem [shape: f32[2,128], index: 7, kind: output, shape index: {}]  }
   0x1   :  { %13 = vsyncpa [#allocation5], 0  ;;  %s35_s26 = sshll.u32 %s2370_s3, 4  ;;  %s1544_s27 = smov [#allocation4]   ;;  %s36_s26 = int_to_ptr.hbm [resolvable:$true] %s35_s26 }
   0x2   :  { %s37_s28 = sshll.u32 %s1544_s27, 4  ;;  %s20_s8 = sshll.u32 %s2368_s1, 4  ;;  %s38_s28 = int_to_ptr.vmem [resolvable:$true] %s37_s28  ;;  %s21_s8 = int_to_ptr.hbm [resolvable:$true] %s20_s8 }
   0x3   :  { %s1545_s9 = smov 384   ;;  %s1546_s10 = smov 24  }
   0x4   :  { %43 = dma.hbm_to_vmem [thread:$0]  %s36_s26, 6144, %s38_s28, [#allocation5], %s1545_s9, %s1545_s9, %s1546_s10  }
   0x5   :  { %s1547_s11 = smov [#allocation2]   ;;  %s50_s15 = sshll.u32 %s2372_s5, 4  ;;  %s51_s15 = int_to_ptr.hbm [resolvable:$true] %s50_s15 }
   0x6   :  { %s22_s12 = sshll.u32 %s1547_s11, 4  ;;  %s1548_s3 = smov [#allocation6]   ;;  %s23_s12 = int_to_ptr.vmem [resolvable:$true] %s22_s12 }
   0x7   :  { %28 = dma.hbm_to_vmem [thread:$0]  %s21_s8, 768, %s23_s12, [#allocation3], %s1545_s9, %s1545_s9, %s1546_s10  }
   0x8   :  { %s52_s16 = sshll.u32 %s1548_s3, 4  ;;  %s1549_s17 = smov 128   ;;  %s53_s16 = int_to_ptr.vmem [resolvable:$true] %s52_s16 }
   0x9   :  { %s1550_s18 = smov 8  }
   0xa   :  { %58 = dma.hbm_to_vmem [thread:$0]  %s51_s15, 2048, %s53_s16, [#allocation5], %s1549_s17, %s1549_s17, %s1550_s18  }
   0xb   :  { %1540 = dma.done.wait [#allocation3], 768  }
   0xc   :  { %1541 = vsyncadd [#allocation3], 4294966528 }
   0xd   :  { %1542 = dma.done.wait [#allocation5], 8192  }
   0xe   :  { %1543 = vsyncadd [#allocation5], 4294959104  ;;  %v1601_v0 = vld [vmem:[#allocation4 + $0x168] sm:$0xff]  ;;  %v1603_v1 = vld [vmem:[#allocation4 + $0x150] sm:$0xff]  ;;  %vm89_vm0 = vcmask 130048   ;;  %v1551_v52 = vmov 0.0  }
   0xf   :  { %208 = vmatpush.msra.mxu3 %v1601_v0  ;;  %v1606_v2 = vld [vmem:[#allocation2 + $0x18] sm:$0xff]  ;;  %v1608_v3 = vld [vmem:[#allocation4 + $0x138] sm:$0xff]  ;;  %v1611_v4 = vld [vmem:[#allocation2] sm:$0xff] }
  0x10   :  { %107 = vmatpush.msra.mxu0 %v1606_v2  ;;  %v1614_v5 = vld [vmem:[#allocation4 + $0x170] sm:$0xff]  ;;  %v1616_v6 = vld [vmem:[#allocation4 + $0x120] sm:$0xff]  ;;  %v1619_v7 = vld [vmem:[#allocation4 + $0x158] sm:$0xff] }
  0x11   :  { %209 = vmatpush.msra.mxu3 %v1603_v1  ;;  %2427 = vst [vmem:[#allocation9_spill] sm:$0xff] %v1619_v7  ;;  %v1621_v8 = vld [vmem:[#allocation2 + $0x20] sm:$0xff]  ;;  %v1625_v9 = vld [vmem:[#allocation2 + $0x8] sm:$0xff]  ;;  %v1627_v10 = vld [vmem:[#allocation4 + $0x108] sm:$0xff] }
  0x12   :  { %108 = vmatpush.msra.mxu0 %v1611_v4  ;;  %v1629_v11 = vld [vmem:[#allocation4 + $0x140] sm:$0xff]  ;;  %127 = vmatpush.msra.mxu1 %v1621_v8  ;;  %v1634_v12 = vld [vmem:[#allocation4 + $0x178] sm:$0xff]  ;;  %v1636_v13 = vld [vmem:[#allocation4 + $0xf0] sm:$0xff] }
  0x13   :  { %210 = vmatpush.msra.mxu3 %v1608_v3  ;;  %2428 = vst [vmem:[#allocation10_spill] sm:$0xff] %v1629_v11  ;;  %v1638_v14 = vld [vmem:[#allocation4 + $0x128] sm:$0xff]  ;;  %v1643_v15 = vld [vmem:[#allocation4 + $0x160] sm:$0xff]  ;;  %v1645_v16 = vld [vmem:[#allocation4 + $0xd8] sm:$0xff] }
  0x14   :  { %228 = vmatpush.msrb.mxu0 %v1614_v5  ;;  %2429 = vst [vmem:[#allocation11_spill] sm:$0xff] %v1638_v14  ;;  %128 = vmatpush.msra.mxu1 %v1625_v9  ;;  %v1647_v17 = vld [vmem:[#allocation4 + $0x110] sm:$0xff]  ;;  %v1652_v18 = vld [vmem:[#allocation4 + $0x148] sm:$0xff]  ;;  %v1654_v19 = vld [vmem:[#allocation4 + $0xc0] sm:$0xff] }
  0x15   :  { %211 = vmatpush.msra.mxu3 %v1616_v6  ;;  %2430 = vst [vmem:[#allocation12_spill] sm:$0xff] %v1647_v17  ;;  %v1656_v20 = vld [vmem:[#allocation4 + $0xf8] sm:$0xff]  ;;  %v1661_v21 = vld [vmem:[#allocation4 + $0x130] sm:$0xff]  ;;  %v1668_v23 = vld [vmem:[#allocation4 + $0xa8] sm:$0xff] }
  0x16   :  { %229 = vmatpush.msrb.mxu0 %v1619_v7  ;;  %248 = vmatpush.msrb.mxu1 %v1634_v12  ;;  %2431 = vst [vmem:[#allocation13_spill] sm:$0xff] %v1656_v20  ;;  %v1666_v22 = vld [vmem:[%s2367_s0] sm:$0x3]  ;;  %v1670_v24 = vld [vmem:[#allocation4 + $0xe0] sm:$0xff]  ;;  %v1677_v25 = vld [vmem:[#allocation4 + $0x118] sm:$0xff] }
  0x17   :  { %212 = vmatpush.msra.mxu3 %v1627_v10  ;;  %2432 = vst [vmem:[#allocation14_spill] sm:$0xff] %v1670_v24  ;;  %1326 = vmatmul.msk.f32.vlgmr.msra.gmra.mxu0 %vm89_vm0, %v1666_v22  ;;  %v1679_v26 = vld [vmem:[#allocation4 + $0x90] sm:$0xff]  ;;  %v1681_v27 = vld [vmem:[#allocation4 + $0xc8] sm:$0xff]  ;;  %v1684_v28 = vld [vmem:[#allocation2 + $0x28] sm:$0xff] }
  0x18   :  { %230 = vmatpush.msrb.mxu0 %v1629_v11  ;;  %249 = vmatpush.msrb.mxu1 %v1643_v15  ;;  %2433 = vst [vmem:[#allocation15_spill] sm:$0xff] %v1681_v27  ;;  %v1688_v29 = vld [vmem:[#allocation4 + $0x100] sm:$0xff]  ;;  %v1692_v31 = vld [vmem:[#allocation4 + $0x78] sm:$0xff]  ;;  %v1694_v32 = vld [vmem:[#allocation4 + $0xb0] sm:$0xff] }
  0x19   :  { %213 = vmatpush.msra.mxu3 %v1636_v13  ;;  %v1690_v30 = vld [vmem:[#allocation2 + $0x10] sm:$0xff]  ;;  %2434 = vst [vmem:[#allocation16_spill] sm:$0xff] %v1694_v32  ;;  %147 = vmatpush.msra.mxu2 %v1684_v28  ;;  %v1700_v33 = vld [vmem:[#allocation4 + $0xe8] sm:$0xff]  ;;  %v1704_v35 = vld [vmem:[#allocation4 + $0x98] sm:$0xff] }
  0x1a   :  { %231 = vmatpush.msrb.mxu0 %v1638_v14  ;;  %250 = vmatpush.msrb.mxu1 %v1652_v18  ;;  %v1702_v34 = vld [vmem:[#allocation4 + $0x60] sm:$0xff]  ;;  %2435 = vst [vmem:[#allocation17_spill] sm:$0xff] %v1704_v35  ;;  %v1710_v36 = vld [vmem:[#allocation4 + $0xd0] sm:$0xff]  ;;  %v1712_v37 = vld [vmem:[#allocation4 + $0x48] sm:$0xff] }
  0x1b   :  { %214 = vmatpush.msra.mxu3 %v1645_v16  ;;  %148 = vmatpush.msra.mxu2 %v1690_v30  ;;  %v1714_v38 = vld [vmem:[#allocation4 + $0x80] sm:$0xff]  ;;  %v1721_v39 = vld [vmem:[#allocation4 + $0xb8] sm:$0xff]  ;;  %v1723_v40 = vld [vmem:[#allocation4 + $0x30] sm:$0xff] }
  0x1c   :  { %232 = vmatpush.msrb.mxu0 %v1647_v17  ;;  %251 = vmatpush.msrb.mxu1 %v1661_v21  ;;  %2436 = vst [vmem:[#allocation18_spill] sm:$0xff] %v1714_v38  ;;  %v1725_v41 = vld [vmem:[#allocation4 + $0x68] sm:$0xff]  ;;  %v1731_v42 = vld [vmem:[#allocation4 + $0xa0] sm:$0xff]  ;;  %v1733_v43 = vld [vmem:[#allocation4 + $0x18] sm:$0xff] }
  0x1d   :  { %215 = vmatpush.msra.mxu3 %v1654_v19  ;;  %1328 = vmatmul.msk.f32.vlgmr.msra.gmra.mxu2 %vm89_vm0, %v1666_v22  ;;  %2437 = vst [vmem:[#allocation19_spill] sm:$0xff] %v1725_v41  ;;  %v1735_v44 = vld [vmem:[#allocation4 + $0x50] sm:$0xff]  ;;  %v1741_v45 = vld [vmem:[#allocation4 + $0x88] sm:$0xff]  ;;  %v1748_v47 = vld [vmem:[#allocation4] sm:$0xff] }
  0x1e   :  { %233 = vmatpush.msrb.mxu0 %v1656_v20  ;;  %252 = vmatpush.msrb.mxu1 %v1677_v25  ;;  %2438 = vst [vmem:[#allocation20_spill] sm:$0xff] %v1735_v44  ;;  %v1746_v46 = vld [vmem:[%s2367_s0 + $0x2] sm:$0x3]  ;;  %v1750_v48 = vld [vmem:[#allocation4 + $0x38] sm:$0xff]  ;;  %v1758_v50 = vld [vmem:[#allocation4 + $0x20] sm:$0xff] }
  0x1f   :  { %216 = vmatpush.msra.mxu3 %v1668_v23  ;;  %304 = vmatpush.msrb.mxu2 %v1606_v2  ;;  %2439 = vst [vmem:[#allocation21_spill] sm:$0xff] %v1750_v48  ;;  %v1756_v49 = vld [vmem:[#allocation4 + $0x70] sm:$0xff]  ;;  %v1765_v51 = vld [vmem:[#allocation4 + $0x58] sm:$0xff]  ;;  %v1767_v53 = vld [vmem:[#allocation4 + $0x8] sm:$0xff] }
  0x20   :  { %234 = vmatpush.msrb.mxu0 %v1670_v24  ;;  %253 = vmatpush.msrb.mxu1 %v1688_v29  ;;  %2440 = vst [vmem:[#allocation22_spill] sm:$0xff] %v1758_v50  ;;  %v1773_v54 = vld [vmem:[#allocation4 + $0x40] sm:$0xff]  ;;  %v1778_v55 = vld [vmem:[#allocation4 + $0x28] sm:$0xff]  ;;  %v1782_v56 = vld [vmem:[#allocation4 + $0x10] sm:$0xff] }
  0x21   :  { %217 = vmatpush.msra.mxu3 %v1679_v26  ;;  %305 = vmatpush.msrb.mxu2 %v1611_v4  ;;  %2441 = vst [vmem:[#allocation23_spill] sm:$0xff] %v1767_v53  ;;  %v79_v58 = vld [vmem:[%s2369_s2] sm:$0x7] }
  0x22   :  { %235 = vmatpush.msrb.mxu0 %v1681_v27  ;;  %254 = vmatpush.msrb.mxu1 %v1700_v33  ;;  %v80_v59 = vld [vmem:[%s2371_s4] sm:$0x7]  ;;  %v1883_v60 = vperm.slane %v79_v58, 1  ;;  %v1885_v61 = vperm.slane %v79_v58, 0 }
  0x23   :  { %218 = vmatpush.msra.mxu3 %v1692_v31  ;;  %324 = vmatpush.msra.mxu2 %v1621_v8  ;;  %v1887_v63 = vperm.slane %v80_v59, 1 }
  0x24   :  { %236 = vmatpush.msrb.mxu0 %v1694_v32  ;;  %255 = vmatpush.msrb.mxu1 %v1710_v36  ;;  %2442 = vst [vmem:[#allocation24_spill] sm:$0xff] %v1883_v60 }
  0x25   :  { %219 = vmatpush.msra.mxu3 %v1702_v34  ;;  %1330 = vmatmul.msk.f32.vlgmr.msrb.gmra.mxu2 %vm89_vm0, %v1746_v46  ;;  %2443 = vst [vmem:[#allocation25_spill] sm:$0xff] %v1885_v61 }
  0x26   :  { %237 = vmatpush.msrb.mxu0 %v1704_v35  ;;  %256 = vmatpush.msrb.mxu1 %v1721_v39  ;;  %2444 = vst [vmem:[#allocation26_spill] sm:$0xff] %v1887_v63 }
  0x27   :  { %220 = vmatpush.msra.mxu3 %v1712_v37  ;;  %1327 = vmatmul.msk.f32.vlgmr.msra.gmra.mxu1 %vm89_vm0, %v1666_v22  ;;  %v1889_v22 = vperm.slane %v80_v59, 0 }
  0x28   :  { %238 = vmatpush.msrb.mxu0 %v1714_v38  ;;  %257 = vmatpush.msrb.mxu1 %v1731_v42 }
  0x29   :  { %221 = vmatpush.msra.mxu3 %v1723_v40  ;;  %325 = vmatpush.msra.mxu2 %v1625_v9  ;;  %2445 = vst [vmem:[#allocation27_spill] sm:$0xff] %v1889_v22 }
  0x2a   :  { %239 = vmatpush.msrb.mxu0 %v1725_v41  ;;  %258 = vmatpush.msrb.mxu1 %v1741_v45 }
  0x2b   :  { %222 = vmatpush.msra.mxu3 %v1733_v43  ;;  %344 = vmatpush.msrb.mxu2 %v1684_v28 }
  0x2c   :  { %240 = vmatpush.msrb.mxu0 %v1735_v44  ;;  %259 = vmatpush.msrb.mxu1 %v1756_v49 }
  0x2d   :  { %223 = vmatpush.msra.mxu3 %v1748_v47  ;;  %345 = vmatpush.msrb.mxu2 %v1690_v30 }
  0x2e   :  { %241 = vmatpush.msrb.mxu0 %v1750_v48  ;;  %224 = vmatmul.f32.vlgmr.msra.gmra.mxu3 %v1551_v52 }
  0x2f   :  { %260 = vmatpush.msrb.mxu1 %v1765_v51  ;;  %370 = vmatpush.msrb.mxu3 %v1614_v5 }
  0x30   :  { %242 = vmatpush.msrb.mxu0 %v1758_v50  ;;  %1331 = vmatmul.msk.f32.vlgmr.msra.gmra.mxu2 %vm89_vm0, %v1746_v46 }
  0x31   :  { %261 = vmatpush.msrb.mxu1 %v1773_v54  ;;  %350 = vmatpush.msra.mxu2 %v1601_v0 }
  0x32   :  { %243 = vmatpush.msrb.mxu0 %v1767_v53  ;;  %371 = vmatpush.msrb.mxu3 %v1619_v7 }
  0x33   :  { %244 = vmatmul.f32.vlgmr.msrb.gmra.mxu0 %v1551_v52  ;;  %262 = vmatpush.msrb.mxu1 %v1778_v55 }
  0x34   :  { %390 = vmatpush.msra.mxu0 %v1634_v12  ;;  %351 = vmatpush.msra.mxu2 %v1603_v1 }
  0x35   :  { %263 = vmatpush.msrb.mxu1 %v1782_v56  ;;  %372 = vmatpush.msrb.mxu3 %v1629_v11 }
  0x36   :  { %264 = vmatmul.f32.vlgmr.msrb.gmra.mxu1 %v1551_v52  ;;  %391 = vmatpush.msra.mxu0 %v1643_v15 }
  0x37   :  { %352 = vmatpush.msra.mxu2 %v1608_v3  ;;  %446 = vmatpush.msra.mxu1 %v1606_v2 }
  0x38   :  { %392 = vmatpush.msra.mxu0 %v1652_v18  ;;  %373 = vmatpush.msrb.mxu3 %v1638_v14 }
  0x39   :  { %353 = vmatpush.msra.mxu2 %v1616_v6  ;;  %447 = vmatpush.msra.mxu1 %v1611_v4 }
  0x3a   :  { %393 = vmatpush.msra.mxu0 %v1661_v21  ;;  %374 = vmatpush.msrb.mxu3 %v1647_v17 }
  0x3b   :  { %354 = vmatpush.msra.mxu2 %v1627_v10  ;;  %466 = vmatpush.msrb.mxu1 %v1621_v8 }
  0x3c   :  { %394 = vmatpush.msra.mxu0 %v1677_v25  ;;  %375 = vmatpush.msrb.mxu3 %v1656_v20 }
  0x3d   :  { %355 = vmatpush.msra.mxu2 %v1636_v13  ;;  %467 = vmatpush.msrb.mxu1 %v1625_v9 }
  0x3e   :  { %395 = vmatpush.msra.mxu0 %v1688_v29  ;;  %376 = vmatpush.msrb.mxu3 %v1670_v24 }
  0x3f   :  { %356 = vmatpush.msra.mxu2 %v1645_v16 }
  0x40   :  { %396 = vmatpush.msra.mxu0 %v1700_v33  ;;  %377 = vmatpush.msrb.mxu3 %v1681_v27 }
  0x41   :  { %357 = vmatpush.msra.mxu2 %v1654_v19 }
  0x42   :  { %397 = vmatpush.msra.mxu0 %v1710_v36  ;;  %378 = vmatpush.msrb.mxu3 %v1694_v32 }
  0x43   :  { %358 = vmatpush.msra.mxu2 %v1668_v23 }
  0x44   :  { %398 = vmatpush.msra.mxu0 %v1721_v39  ;;  %379 = vmatpush.msrb.mxu3 %v1704_v35 }
  0x45   :  { %359 = vmatpush.msra.mxu2 %v1679_v26 }
  0x46   :  { %399 = vmatpush.msra.mxu0 %v1731_v42  ;;  %380 = vmatpush.msrb.mxu3 %v1714_v38 }
  0x47   :  { %360 = vmatpush.msra.mxu2 %v1692_v31 }
  0x48   :  { %400 = vmatpush.msra.mxu0 %v1741_v45  ;;  %381 = vmatpush.msrb.mxu3 %v1725_v41 }
  0x49   :  { %361 = vmatpush.msra.mxu2 %v1702_v34 }
  0x4a   :  { %401 = vmatpush.msra.mxu0 %v1756_v49  ;;  %1332 = vmatmul.msk.f32.vlgmr.msrb.gmra.mxu2 %vm89_vm0, %v1746_v46 }
  0x4b   :  { %362 = vmatpush.msra.mxu2 %v1712_v37  ;;  %382 = vmatpush.msrb.mxu3 %v1735_v44 }
  0x4c   :  { %402 = vmatpush.msra.mxu0 %v1765_v51 }
  0x4d   :  { %363 = vmatpush.msra.mxu2 %v1723_v40  ;;  %383 = vmatpush.msrb.mxu3 %v1750_v48 }
  0x4e   :  { %403 = vmatpush.msra.mxu0 %v1773_v54 }
  0x4f   :  { %364 = vmatpush.msra.mxu2 %v1733_v43  ;;  %384 = vmatpush.msrb.mxu3 %v1758_v50 }
  0x50   :  { %404 = vmatpush.msra.mxu0 %v1778_v55 }
  0x51   :  { %365 = vmatpush.msra.mxu2 %v1748_v47  ;;  %385 = vmatpush.msrb.mxu3 %v1767_v53 }
  0x52   :  { %405 = vmatpush.msra.mxu0 %v1782_v56 }
  0x53   :  { %512 = vmatpush.msrb.mxu2 %v1614_v5  ;;  %532 = vmatpush.msra.mxu3 %v1634_v12 }
  0x54   :  { %588 = vmatpush.msrb.mxu0 %v1606_v2 }
  0x55   :  { %513 = vmatpush.msrb.mxu2 %v1619_v7  ;;  %533 = vmatpush.msra.mxu3 %v1643_v15 }
  0x56   :  { %589 = vmatpush.msrb.mxu0 %v1611_v4 }
  0x57   :  { %514 = vmatpush.msrb.mxu2 %v1629_v11  ;;  %534 = vmatpush.msra.mxu3 %v1652_v18 }
  0x59   :  { %515 = vmatpush.msrb.mxu2 %v1638_v14  ;;  %535 = vmatpush.msra.mxu3 %v1661_v21 }
  0x5b   :  { %516 = vmatpush.msrb.mxu2 %v1647_v17  ;;  %536 = vmatpush.msra.mxu3 %v1677_v25 }
  0x5d   :  { %517 = vmatpush.msrb.mxu2 %v1656_v20  ;;  %537 = vmatpush.msra.mxu3 %v1688_v29  ;;  %v1897_v20 = vperm.slane %v79_v58, 2 }
  0x5f   :  { %518 = vmatpush.msrb.mxu2 %v1670_v24  ;;  %538 = vmatpush.msra.mxu3 %v1700_v33 }
  0x61   :  { %519 = vmatpush.msrb.mxu2 %v1681_v27  ;;  %539 = vmatpush.msra.mxu3 %v1710_v36  ;;  %v1895_v27 = vperm.slane %v80_v59, 2 }
  0x63   :  { %520 = vmatpush.msrb.mxu2 %v1694_v32  ;;  %540 = vmatpush.msra.mxu3 %v1721_v39  ;;  %2446 = vst [vmem:[#allocation28_spill] sm:$0xff] %v1895_v27 }
  0x65   :  { %521 = vmatpush.msrb.mxu2 %v1704_v35  ;;  %541 = vmatpush.msra.mxu3 %v1731_v42 }
  0x67   :  { %522 = vmatpush.msrb.mxu2 %v1714_v38  ;;  %542 = vmatpush.msra.mxu3 %v1741_v45 }
  0x69   :  { %523 = vmatpush.msrb.mxu2 %v1725_v41  ;;  %543 = vmatpush.msra.mxu3 %v1756_v49 }
  0x6b   :  { %524 = vmatpush.msrb.mxu2 %v1735_v44  ;;  %544 = vmatpush.msra.mxu3 %v1765_v51 }
  0x6d   :  { %525 = vmatpush.msrb.mxu2 %v1750_v48  ;;  %545 = vmatpush.msra.mxu3 %v1773_v54 }
  0x6f   :  { %526 = vmatpush.msrb.mxu2 %v1758_v50  ;;  %546 = vmatpush.msra.mxu3 %v1778_v55 }
  0x71   :  { %527 = vmatpush.msrb.mxu2 %v1767_v53  ;;  %547 = vmatpush.msra.mxu3 %v1782_v56 }
  0x94   :  { %v110_v57 = vpop.f32.mrf.mxu0 }
  0x95   :  { %v111_v53 = vadd.f32 %v110_v57, %v1885_v61 }
  0xa0   :  { %v150_v17 = vpop.f32.mrf.mxu2 }
  0xa4   :  { %v130_v62 = vpop.f32.mrf.mxu1 }
  0xa5   :  { %v131_v46 = vadd.f32 %v130_v62, %v1883_v60 }
  0xb0   :  { %v245_v52 = vpop.f32.mrf.mxu0 }
  0xb1   :  { %v246_v50 = vadd.f32 %v245_v52, %v1887_v63  ;;  %v225_v48 = vpop.f32.mrf.mxu3 }
  0xb2   :  { %v226_v44 = vadd.f32 %v225_v48, %v1889_v22  ;;  %v151_v48 = vadd.f32 %v150_v17, %v1897_v20 }
  0xb3   :  { %v269_v41 = vadd.f32 %v246_v50, %v131_v46  ;;  %v265_v24 = vpop.f32.mrf.mxu1 }
  0xb4   :  { %v268_v38 = vadd.f32 %v226_v44, %v111_v53  ;;  %v266_v57 = vadd.f32 %v265_v24, %v1895_v27 }
  0xb5   :  { %v271_v32 = vmul.f32 0.5, %v269_v41 }
  0xb6   :  { %v270_v35 = vmul.f32 0.5, %v268_v38 }
  0xb8   :  { %1366 = vtanh.f32 %v270_v35 }
  0xb9   :  { %1368 = vtanh.f32 %v271_v32 }
  0xbe   :  { %v1367_v62 = vpop.eup %1366 }
  0xbf   :  { %v274_v14 = vmul.f32 0.5, %v1367_v62  ;;  %v1369_v52 = vpop.eup %1368 }
  0xc0   :  { %v275_v44 = vmul.f32 0.5, %v1369_v52 }
  0xc1   :  { %v276_v11 = vadd.f32 0.5, %v274_v14  ;;  %v307_v14 = vpop.f32.mrf.mxu2 }
  0xc2   :  { %v277_v35 = vadd.f32 0.5, %v275_v44 }
  0xc3   :  { %v278_v50 = vmul.f32 %v276_v11, %v266_v57  ;;  %v1333_v11 = vld [vmem:[%s2367_s0 + $0x4] sm:$0x3]  ;;  %v308_v57 = vadd.f32 %v307_v14, %v1885_v61 }
  0xc4   :  { %v281_v32 = vsub.f32 1.0, %v277_v35  ;;  %v283_v53 = vmul.f32 0.0, %v277_v35  ;;  %1334 = vmatmul.msk.f32.vlgmr.msra.gmra.mxu1 %vm89_vm0, %v1333_v11  ;;  %v2456_v61 = vld [vmem:[#allocation19_spill] sm:$0xff] }
  0xc5   :  { %v279_v38 = vadd.f32 %v278_v50, %v151_v48  ;;  %486 = vmatpush.msra.mxu1 %v1684_v28 }
  0xc7   :  { %1370 = vtanh.f32 %v279_v38  ;;  %487 = vmatpush.msra.mxu1 %v1690_v30 }
  0xc9   :  { %v327_v17 = vpop.f32.mrf.mxu2 }
  0xca   :  { %v328_v52 = vadd.f32 %v327_v17, %v1883_v60  ;;  %v2450_v17 = vld [vmem:[#allocation13_spill] sm:$0xff] }
  0xcb   :  { %v2454_v60 = vld [vmem:[#allocation17_spill] sm:$0xff] }
  0xcc   :  { %1335 = vmatmul.msk.f32.vlgmr.msrb.gmra.mxu1 %vm89_vm0, %v1333_v11 }
  0xcd   :  { %v1371_v41 = vpop.eup %1370  ;;  %492 = vmatpush.msrb.mxu1 %v1601_v0 }
  0xce   :  { %v282_v59 = vmul.f32 %v1371_v41, %v281_v32  ;;  %v2447_v41 = vld [vmem:[#allocation10_spill] sm:$0xff] }
  0xcf   :  { %493 = vmatpush.msrb.mxu1 %v1603_v1 }
  0xd0   :  { %v1901_v58 = vadd.f32 %v283_v53, %v282_v59  ;;  %v2448_v53 = vld [vmem:[#allocation11_spill] sm:$0xff]  ;;  %v2449_v59 = vld [vmem:[#allocation12_spill] sm:$0xff] }
  0xd1   :  { %494 = vmatpush.msrb.mxu1 %v1608_v3  ;;  %v347_v24 = vpop.f32.mrf.mxu2 }
  0xd2   :  { %366 = vmatmul.f32.vlgmr.msra.gmra.mxu2 %v1901_v58  ;;  %386 = vmatmul.f32.vlgmr.msrb.gmra.mxu3 %v1901_v58 }
  0xd3   :  { %406 = vmatmul.f32.vlgmr.msra.gmra.mxu0 %v1901_v58  ;;  %674 = vmatpush.msra.mxu2 %v1634_v12 }
  0xd4   :  { %608 = vmatpush.msra.mxu0 %v1621_v8  ;;  %730 = vmatpush.msrb.mxu3 %v1606_v2 }
  0xd5   :  { %675 = vmatpush.msra.mxu2 %v1643_v15  ;;  %495 = vmatpush.msrb.mxu1 %v1616_v6 }
  0xd6   :  { %609 = vmatpush.msra.mxu0 %v1625_v9  ;;  %731 = vmatpush.msrb.mxu3 %v1611_v4 }
  0xd7   :  { %676 = vmatpush.msra.mxu2 %v1652_v18  ;;  %1336 = vmatmul.msk.f32.vlgmr.msra.gmra.mxu1 %vm89_vm0, %v1333_v11 }
  0xd8   :  { %496 = vmatpush.msrb.mxu1 %v1627_v10 }
  0xd9   :  { %677 = vmatpush.msra.mxu2 %v1661_v21 }
  0xda   :  { %497 = vmatpush.msrb.mxu1 %v1636_v13 }
  0xdb   :  { %678 = vmatpush.msra.mxu2 %v1677_v25 }
  0xdc   :  { %498 = vmatpush.msrb.mxu1 %v1645_v16 }
  0xdd   :  { %679 = vmatpush.msra.mxu2 %v1688_v29 }
  0xde   :  { %499 = vmatpush.msrb.mxu1 %v1654_v19 }
  0xdf   :  { %680 = vmatpush.msra.mxu2 %v1700_v33 }
  0xe0   :  { %500 = vmatpush.msrb.mxu1 %v1668_v23 }
  0xe1   :  { %681 = vmatpush.msra.mxu2 %v1710_v36 }
  0xe2   :  { %501 = vmatpush.msrb.mxu1 %v1679_v26 }
  0xe3   :  { %682 = vmatpush.msra.mxu2 %v1721_v39 }
  0xe4   :  { %502 = vmatpush.msrb.mxu1 %v1692_v31 }
  0xe5   :  { %683 = vmatpush.msra.mxu2 %v1731_v42 }
  0xe6   :  { %503 = vmatpush.msrb.mxu1 %v1702_v34 }
  0xe7   :  { %684 = vmatpush.msra.mxu2 %v1741_v45 }
  0xe8   :  { %504 = vmatpush.msrb.mxu1 %v1712_v37 }
  0xe9   :  { %685 = vmatpush.msra.mxu2 %v1756_v49 }
  0xea   :  { %505 = vmatpush.msrb.mxu1 %v1723_v40 }
  0xeb   :  { %686 = vmatpush.msra.mxu2 %v1765_v51 }
  0xec   :  { %506 = vmatpush.msrb.mxu1 %v1733_v43 }
  0xed   :  { %687 = vmatpush.msra.mxu2 %v1773_v54 }
  0xee   :  { %507 = vmatpush.msrb.mxu1 %v1748_v47 }
  0xef   :  { %688 = vmatpush.msra.mxu2 %v1778_v55 }
  0xf0   :  { %654 = vmatpush.msra.mxu1 %v1614_v5 }
  0xf1   :  { %689 = vmatpush.msra.mxu2 %v1782_v56 }
  0xf2   :  { %655 = vmatpush.msra.mxu1 %v1619_v7 }
  0xf4   :  { %656 = vmatpush.msra.mxu1 %v2447_v41 }
  0xf6   :  { %657 = vmatpush.msra.mxu1 %v2448_v53 }
  0xf8   :  { %658 = vmatpush.msra.mxu1 %v2449_v59 }
  0xfa   :  { %659 = vmatpush.msra.mxu1 %v2450_v17 }
 0x150   :  { %v407_v14 = vpop.f32.mrf.mxu0 }
 0x155   :  { %v367_v46 = vpop.f32.mrf.mxu2  ;;  %v387_v62 = vpop.f32.mrf.mxu3 }
 0x156   :  { %v368_v48 = vadd.f32 %v367_v46, %v1889_v22  ;;  %v388_v50 = vadd.f32 %v387_v62, %v1887_v63  ;;  %v2451_v62 = vld [vmem:[#allocation14_spill] sm:$0xff] }
 0x157   :  { %660 = vmatpush.msra.mxu1 %v2451_v62 }
 0x158   :  { %v410_v44 = vadd.f32 %v368_v48, %v308_v57  ;;  %v411_v38 = vadd.f32 %v388_v50, %v328_v52  ;;  %v408_v52 = vadd.f32 %v407_v14, %v1895_v27  ;;  %v2452_v50 = vld [vmem:[#allocation15_spill] sm:$0xff]  ;;  %v2457_v14 = vld [vmem:[#allocation20_spill] sm:$0xff] }
 0x159   :  { %661 = vmatpush.msra.mxu1 %v2452_v50 }
 0x15a   :  { %v412_v35 = vmul.f32 0.5, %v410_v44  ;;  %v413_v32 = vmul.f32 0.5, %v411_v38  ;;  %v348_v44 = vadd.f32 %v347_v24, %v1897_v20 }
 0x15c   :  { %1372 = vtanh.f32 %v412_v35 }
 0x15d   :  { %1374 = vtanh.f32 %v413_v32  ;;  %v2453_v32 = vld [vmem:[#allocation16_spill] sm:$0xff] }
 0x15e   :  { %662 = vmatpush.msra.mxu1 %v2453_v32 }
 0x160   :  { %663 = vmatpush.msra.mxu1 %v2454_v60 }
 0x162   :  { %v1373_v11 = vpop.eup %1372 }
 0x163   :  { %v416_v46 = vmul.f32 0.5, %v1373_v11  ;;  %v1375_v57 = vpop.eup %1374  ;;  %v2455_v11 = vld [vmem:[#allocation18_spill] sm:$0xff] }
 0x164   :  { %v417_v35 = vmul.f32 0.5, %v1375_v57  ;;  %664 = vmatpush.msra.mxu1 %v2455_v11 }
 0x165   :  { %v418_v48 = vadd.f32 0.5, %v416_v46 }
 0x166   :  { %v419_v22 = vadd.f32 0.5, %v417_v35  ;;  %665 = vmatpush.msra.mxu1 %v2456_v61  ;;  %v2462_v35 = vld [vmem:[#allocation25_spill] sm:$0xff] }
 0x167   :  { %v420_v38 = vmul.f32 %v418_v48, %v408_v52  ;;  %v2458_v52 = vld [vmem:[#allocation21_spill] sm:$0xff]  ;;  %v2459_v48 = vld [vmem:[#allocation22_spill] sm:$0xff] }
 0x168   :  { %v423_v62 = vsub.f32 1.0, %v419_v22  ;;  %666 = vmatpush.msra.mxu1 %v2457_v14  ;;  %v425_v27 = vmul.f32 %v419_v22, %v1901_v58  ;;  %v2461_v22 = vld [vmem:[#allocation14_spill] sm:$0xff]  ;;  %v449_v58 = vpop.f32.mrf.mxu1 }
 0x169   :  { %v421_v63 = vadd.f32 %v420_v38, %v348_v44 }
 0x16a   :  { %667 = vmatpush.msra.mxu1 %v2458_v52 }
 0x16b   :  { %1376 = vtanh.f32 %v421_v63  ;;  %v2460_v63 = vld [vmem:[#allocation23_spill] sm:$0xff] }
 0x16c   :  { %668 = vmatpush.msra.mxu1 %v2459_v48 }
 0x16e   :  { %669 = vmatpush.msra.mxu1 %v2460_v63 }
 0x171   :  { %v1377_v46 = vpop.eup %1376 }
 0x172   :  { %v424_v24 = vmul.f32 %v1377_v46, %v423_v62  ;;  %v469_v62 = vpop.f32.mrf.mxu1  ;;  %v450_v46 = vadd.f32 %v449_v58, %v2462_v35 }
 0x174   :  { %v1971_v57 = vadd.f32 %v425_v27, %v424_v24  ;;  %v1337_v27 = vld [vmem:[%s2367_s0 + $0x6] sm:$0x3] }
 0x175   :  { %1338 = vmatmul.msk.f32.vlgmr.msrb.gmra.mxu0 %vm89_vm0, %v1337_v27  ;;  %v2463_v24 = vld [vmem:[#allocation27_spill] sm:$0xff] }
 0x176   :  { %508 = vmatmul.f32.vlgmr.msrb.gmra.mxu1 %v1971_v57  ;;  %528 = vmatmul.f32.vlgmr.msrb.gmra.mxu2 %v1971_v57 }
 0x177   :  { %548 = vmatmul.f32.vlgmr.msra.gmra.mxu3 %v1971_v57  ;;  %816 = vmatpush.msrb.mxu1 %v1634_v12 }
 0x178   :  { %750 = vmatpush.msra.mxu3 %v1621_v8  ;;  %872 = vmatpush.msrb.mxu2 %v1606_v2 }
 0x179   :  { %817 = vmatpush.msrb.mxu1 %v1643_v15  ;;  %628 = vmatpush.msrb.mxu0 %v1684_v28 }
 0x17a   :  { %751 = vmatpush.msra.mxu3 %v1625_v9  ;;  %873 = vmatpush.msrb.mxu2 %v1611_v4  ;;  %v489_v44 = vpop.f32.mrf.mxu1 }
 0x17b   :  { %818 = vmatpush.msrb.mxu1 %v1652_v18  ;;  %629 = vmatpush.msrb.mxu0 %v1690_v30  ;;  %v490_v58 = vadd.f32 %v489_v44, %v1897_v20 }
 0x17d   :  { %819 = vmatpush.msrb.mxu1 %v1661_v21  ;;  %1339 = vmatmul.msk.f32.vlgmr.msra.gmra.mxu0 %vm89_vm0, %v1337_v27 }
 0x17e   :  { %634 = vmatpush.msra.mxu0 %v1601_v0 }
 0x17f   :  { %820 = vmatpush.msrb.mxu1 %v1677_v25 }
 0x180   :  { %635 = vmatpush.msra.mxu0 %v1603_v1 }
 0x181   :  { %821 = vmatpush.msrb.mxu1 %v1688_v29 }
 0x182   :  { %636 = vmatpush.msra.mxu0 %v1608_v3 }
 0x183   :  { %822 = vmatpush.msrb.mxu1 %v1700_v33 }
 0x184   :  { %637 = vmatpush.msra.mxu0 %v1616_v6 }
 0x185   :  { %823 = vmatpush.msrb.mxu1 %v1710_v36  ;;  %1340 = vmatmul.msk.f32.vlgmr.msrb.gmra.mxu0 %vm89_vm0, %v1337_v27 }
 0x186   :  { %638 = vmatpush.msra.mxu0 %v1627_v10 }
 0x187   :  { %824 = vmatpush.msrb.mxu1 %v1721_v39 }
 0x188   :  { %639 = vmatpush.msra.mxu0 %v1636_v13 }
 0x189   :  { %825 = vmatpush.msrb.mxu1 %v1731_v42 }
 0x18a   :  { %640 = vmatpush.msra.mxu0 %v1645_v16 }
 0x18b   :  { %826 = vmatpush.msrb.mxu1 %v1741_v45 }
 0x18c   :  { %641 = vmatpush.msra.mxu0 %v1654_v19 }
 0x18d   :  { %827 = vmatpush.msrb.mxu1 %v1756_v49 }
 0x18e   :  { %642 = vmatpush.msra.mxu0 %v1668_v23 }
 0x18f   :  { %828 = vmatpush.msrb.mxu1 %v1765_v51 }
 0x190   :  { %643 = vmatpush.msra.mxu0 %v1679_v26 }
 0x191   :  { %829 = vmatpush.msrb.mxu1 %v1773_v54 }
 0x192   :  { %644 = vmatpush.msra.mxu0 %v1692_v31 }
 0x193   :  { %830 = vmatpush.msrb.mxu1 %v1778_v55 }
 0x194   :  { %645 = vmatpush.msra.mxu0 %v1702_v34 }
 0x195   :  { %831 = vmatpush.msrb.mxu1 %v1782_v56 }
 0x196   :  { %646 = vmatpush.msra.mxu0 %v1712_v37 }
 0x198   :  { %647 = vmatpush.msra.mxu0 %v1723_v40 }
 0x19a   :  { %648 = vmatpush.msra.mxu0 %v1733_v43 }
 0x19c   :  { %649 = vmatpush.msra.mxu0 %v1748_v47 }
 0x19e   :  { %796 = vmatpush.msrb.mxu0 %v1614_v5 }
 0x1a0   :  { %797 = vmatpush.msrb.mxu0 %v1619_v7 }
 0x1a2   :  { %798 = vmatpush.msrb.mxu0 %v2447_v41 }
 0x1a4   :  { %799 = vmatpush.msrb.mxu0 %v2448_v53  ;;  %v2466_v53 = vld [vmem:[#allocation28_spill] sm:$0xff] }
 0x1a6   :  { %800 = vmatpush.msrb.mxu0 %v2449_v59 }
 0x1a8   :  { %801 = vmatpush.msrb.mxu0 %v2450_v17 }
 0x1aa   :  { %802 = vmatpush.msrb.mxu0 %v2461_v22 }
 0x1ac   :  { %803 = vmatpush.msrb.mxu0 %v2452_v50  ;;  %v2464_v50 = vld [vmem:[#allocation24_spill] sm:$0xff] }
 0x1ae   :  { %804 = vmatpush.msrb.mxu0 %v2453_v32 }
 0x1b0   :  { %805 = vmatpush.msrb.mxu0 %v2454_v60 }
 0x1b2   :  { %806 = vmatpush.msrb.mxu0 %v2455_v11 }
 0x1b4   :  { %807 = vmatpush.msrb.mxu0 %v2456_v61  ;;  %v470_v61 = vadd.f32 %v469_v62, %v2464_v50 }
 0x1b6   :  { %808 = vmatpush.msrb.mxu0 %v2457_v14  ;;  %v2465_v14 = vld [vmem:[#allocation26_spill] sm:$0xff] }
 0x1b8   :  { %809 = vmatpush.msrb.mxu0 %v2458_v52 }
 0x1ba   :  { %810 = vmatpush.msrb.mxu0 %v2459_v48 }
 0x1bc   :  { %811 = vmatpush.msrb.mxu0 %v2460_v63 }
 0x1f3   :  { %v509_v38 = vpop.f32.mrf.mxu1 }
 0x1f4   :  { %v510_v27 = vadd.f32 %v509_v38, %v2463_v24 }
 0x1f6   :  { %v552_v60 = vadd.f32 %v510_v27, %v450_v46 }
 0x1f8   :  { %v554_v32 = vmul.f32 0.5, %v552_v60 }
 0x1f9   :  { %v529_v11 = vpop.f32.mrf.mxu2 }
 0x1fa   :  { %1378 = vtanh.f32 %v554_v32  ;;  %v530_v22 = vadd.f32 %v529_v11, %v2465_v14  ;;  %v549_v48 = vpop.f32.mrf.mxu3 }
 0x1fb   :  { %v550_v41 = vadd.f32 %v549_v48, %v2466_v53 }
 0x1fc   :  { %v553_v17 = vadd.f32 %v530_v22, %v470_v61  ;;  %v1341_v61 = vld [vmem:[%s2367_s0 + $0x8] sm:$0x3] }
 0x1fd   :  { %1342 = vmatmul.msk.f32.vlgmr.msrb.gmra.mxu3 %vm89_vm0, %v1341_v61 }
 0x1fe   :  { %v555_v52 = vmul.f32 0.5, %v553_v17  ;;  %770 = vmatpush.msrb.mxu3 %v1684_v28 }
 0x200   :  { %v1379_v59 = vpop.eup %1378  ;;  %1380 = vtanh.f32 %v555_v52  ;;  %771 = vmatpush.msrb.mxu3 %v1690_v30 }
 0x201   :  { %v558_v63 = vmul.f32 0.5, %v1379_v59 }
 0x203   :  { %v560_v7 = vadd.f32 0.5, %v558_v63 }
 0x205   :  { %v562_v38 = vmul.f32 %v560_v7, %v550_v41  ;;  %1343 = vmatmul.msk.f32.vlgmr.msra.gmra.mxu3 %vm89_vm0, %v1341_v61 }
 0x206   :  { %v1381_v46 = vpop.eup %1380  ;;  %776 = vmatpush.msra.mxu3 %v1601_v0  ;;  %v2467_v0 = vld [vmem:[#allocation9_spill] sm:$0xff] }
 0x207   :  { %v559_v60 = vmul.f32 0.5, %v1381_v46  ;;  %v563_v27 = vadd.f32 %v562_v38, %v490_v58 }
 0x208   :  { %777 = vmatpush.msra.mxu3 %v1603_v1  ;;  %v2468_v1 = vld [vmem:[#allocation10_spill] sm:$0xff] }
 0x209   :  { %1382 = vtanh.f32 %v563_v27  ;;  %v561_v62 = vadd.f32 0.5, %v559_v60 }
 0x20a   :  { %778 = vmatpush.msra.mxu3 %v1608_v3  ;;  %v2470_v3 = vld [vmem:[#allocation12_spill] sm:$0xff] }
 0x20b   :  { %v565_v17 = vsub.f32 1.0, %v561_v62  ;;  %v567_v59 = vmul.f32 %v561_v62, %v1971_v57 }
 0x20c   :  { %779 = vmatpush.msra.mxu3 %v1616_v6  ;;  %v2472_v6 = vld [vmem:[#allocation14_spill] sm:$0xff] }
 0x20d   :  { %1344 = vmatmul.msk.f32.vlgmr.msrb.gmra.mxu3 %vm89_vm0, %v1341_v61 }
 0x20e   :  { %780 = vmatpush.msra.mxu3 %v1627_v10  ;;  %v2475_v10 = vld [vmem:[#allocation17_spill] sm:$0xff] }
 0x20f   :  { %v1383_v32 = vpop.eup %1382 }
 0x210   :  { %v566_v11 = vmul.f32 %v1383_v32, %v565_v17  ;;  %781 = vmatpush.msra.mxu3 %v1636_v13  ;;  %v2478_v13 = vld [vmem:[#allocation20_spill] sm:$0xff] }
 0x212   :  { %v2051_v7 = vadd.f32 %v567_v59, %v566_v11  ;;  %782 = vmatpush.msra.mxu3 %v1645_v16  ;;  %v2480_v16 = vld [vmem:[#allocation22_spill] sm:$0xff] }
 0x214   :  { %650 = vmatmul.f32.vlgmr.msra.gmra.mxu0 %v2051_v7  ;;  %670 = vmatmul.f32.vlgmr.msra.gmra.mxu1 %v2051_v7 }
 0x215   :  { %690 = vmatmul.f32.vlgmr.msra.gmra.mxu2 %v2051_v7  ;;  %958 = vmatpush.msra.mxu0 %v1634_v12  ;;  %v2476_v12 = vld [vmem:[#allocation18_spill] sm:$0xff] }
 0x216   :  { %892 = vmatpush.msra.mxu2 %v1621_v8  ;;  %1014 = vmatpush.msra.mxu1 %v1606_v2  ;;  %v2469_v2 = vld [vmem:[#allocation11_spill] sm:$0xff] }
 0x217   :  { %959 = vmatpush.msra.mxu0 %v1643_v15  ;;  %783 = vmatpush.msra.mxu3 %v1654_v19  ;;  %v2473_v8 = vld [vmem:[#allocation15_spill] sm:$0xff]  ;;  %v2479_v15 = vld [vmem:[#allocation21_spill] sm:$0xff] }
 0x218   :  { %893 = vmatpush.msra.mxu2 %v1625_v9  ;;  %1015 = vmatpush.msra.mxu1 %v1611_v4  ;;  %v2471_v4 = vld [vmem:[#allocation13_spill] sm:$0xff]  ;;  %v2474_v9 = vld [vmem:[#allocation16_spill] sm:$0xff]  ;;  %v2481_v19 = vld [vmem:[#allocation23_spill] sm:$0xff] }
 0x219   :  { %960 = vmatpush.msra.mxu0 %v1652_v18  ;;  %784 = vmatpush.msra.mxu3 %v1668_v23  ;;  %v591_v23 = vpop.f32.mrf.mxu0 }
 0x21a   :  { %v592_v57 = vadd.f32 %v591_v23, %v2462_v35 }
 0x21b   :  { %961 = vmatpush.msra.mxu0 %v1661_v21  ;;  %785 = vmatpush.msra.mxu3 %v1679_v26 }
 0x21d   :  { %962 = vmatpush.msra.mxu0 %v1677_v25  ;;  %786 = vmatpush.msra.mxu3 %v1692_v31 }
 0x21f   :  { %963 = vmatpush.msra.mxu0 %v1688_v29  ;;  %787 = vmatpush.msra.mxu3 %v1702_v34 }
 0x221   :  { %964 = vmatpush.msra.mxu0 %v1700_v33  ;;  %788 = vmatpush.msra.mxu3 %v1712_v37  ;;  %v611_v26 = vpop.f32.mrf.mxu0 }
 0x222   :  { %v612_v48 = vadd.f32 %v611_v26, %v2464_v50 }
 0x223   :  { %965 = vmatpush.msra.mxu0 %v1710_v36  ;;  %789 = vmatpush.msra.mxu3 %v1723_v40 }
 0x225   :  { %966 = vmatpush.msra.mxu0 %v1721_v39  ;;  %790 = vmatpush.msra.mxu3 %v1733_v43 }
 0x227   :  { %967 = vmatpush.msra.mxu0 %v1731_v42  ;;  %791 = vmatpush.msra.mxu3 %v1748_v47 }
 0x229   :  { %968 = vmatpush.msra.mxu0 %v1741_v45  ;;  %938 = vmatpush.msrb.mxu3 %v1614_v5  ;;  %v2477_v5 = vld [vmem:[#allocation19_spill] sm:$0xff]  ;;  %v631_v31 = vpop.f32.mrf.mxu0 }
 0x22a   :  { %v632_v59 = vadd.f32 %v631_v31, %v1897_v20 }
 0x22b   :  { %969 = vmatpush.msra.mxu0 %v1756_v49  ;;  %939 = vmatpush.msrb.mxu3 %v2467_v0 }
 0x22d   :  { %970 = vmatpush.msra.mxu0 %v1765_v51  ;;  %940 = vmatpush.msrb.mxu3 %v2468_v1 }
 0x22f   :  { %971 = vmatpush.msra.mxu0 %v1773_v54  ;;  %941 = vmatpush.msrb.mxu3 %v2469_v2 }
 0x231   :  { %972 = vmatpush.msra.mxu0 %v1778_v55  ;;  %942 = vmatpush.msrb.mxu3 %v2470_v3 }
 0x233   :  { %973 = vmatpush.msra.mxu0 %v1782_v56  ;;  %943 = vmatpush.msrb.mxu3 %v2471_v4 }
 0x235   :  { %944 = vmatpush.msrb.mxu3 %v2472_v6 }
 0x237   :  { %945 = vmatpush.msrb.mxu3 %v2473_v8 }
 0x239   :  { %946 = vmatpush.msrb.mxu3 %v2474_v9 }
 0x23b   :  { %947 = vmatpush.msrb.mxu3 %v2475_v10  ;;  %v2122_v10 = vld [vmem:[#allocation4 + $0x178] sm:$0xff] }
 0x23d   :  { %948 = vmatpush.msrb.mxu3 %v2476_v12  ;;  %v2125_v12 = vld [vmem:[#allocation2 + $0x20] sm:$0xff] }
 0x23f   :  { %949 = vmatpush.msrb.mxu3 %v2477_v5  ;;  %v1416_v5 = vld [vmem:[#allocation2 + $0x18] sm:$0xff] }
 0x241   :  { %950 = vmatpush.msrb.mxu3 %v2478_v13  ;;  %v2131_v13 = vld [vmem:[#allocation2 + $0x8] sm:$0xff] }
 0x243   :  { %951 = vmatpush.msrb.mxu3 %v2479_v15  ;;  %v1419_v15 = vld [vmem:[#allocation2] sm:$0xff] }
 0x245   :  { %952 = vmatpush.msrb.mxu3 %v2480_v16 }
 0x247   :  { %953 = vmatpush.msrb.mxu3 %v2481_v19 }
 0x291   :  { %v651_v41 = vpop.f32.mrf.mxu0  ;;  %v671_v52 = vpop.f32.mrf.mxu1 }
 0x292   :  { %v652_v63 = vadd.f32 %v651_v41, %v2463_v24  ;;  %v672_v22 = vadd.f32 %v671_v52, %v2465_v14  ;;  %v2198_v52 = vld [vmem:[#allocation4 + $0x170] sm:$0xff] }
 0x294   :  { %v694_v44 = vadd.f32 %v652_v63, %v592_v57  ;;  %v695_v58 = vadd.f32 %v672_v22, %v612_v48  ;;  %v2201_v57 = vld [vmem:[#allocation4 + $0x158] sm:$0xff]  ;;  %v2207_v48 = vld [vmem:[#allocation4 + $0x128] sm:$0xff] }
 0x296   :  { %v696_v38 = vmul.f32 0.5, %v694_v44  ;;  %v697_v46 = vmul.f32 0.5, %v695_v58  ;;  %v2213_v44 = vld [vmem:[#allocation4 + $0xf8] sm:$0xff] }
 0x298   :  { %1384 = vtanh.f32 %v696_v38  ;;  %v691_v27 = vpop.f32.mrf.mxu2  ;;  %v2216_v38 = vld [vmem:[#allocation4 + $0xe0] sm:$0xff] }
 0x299   :  { %1386 = vtanh.f32 %v697_v46  ;;  %v692_v17 = vadd.f32 %v691_v27, %v2466_v53 }
 0x29e   :  { %v1385_v60 = vpop.eup %1384 }
 0x29f   :  { %v700_v62 = vmul.f32 0.5, %v1385_v60  ;;  %v1387_v61 = vpop.eup %1386 }
 0x2a0   :  { %v701_v0 = vmul.f32 0.5, %v1387_v61 }
 0x2a1   :  { %v702_v32 = vadd.f32 0.5, %v700_v62  ;;  %v2220_v62 = vld [vmem:[#allocation4 + $0xc8] sm:$0xff] }
 0x2a2   :  { %v703_v2 = vadd.f32 0.5, %v701_v0  ;;  %v2227_v0 = vld [vmem:[#allocation4 + $0x98] sm:$0xff] }
 0x2a3   :  { %v704_v11 = vmul.f32 %v702_v32, %v692_v17 }
 0x2a4   :  { %v707_v3 = vsub.f32 1.0, %v703_v2  ;;  %v709_v6 = vmul.f32 %v703_v2, %v2051_v7  ;;  %v2128_v7 = vld [vmem:[#allocation4 + $0x160] sm:$0xff] }
 0x2a5   :  { %v705_v1 = vadd.f32 %v704_v11, %v632_v59  ;;  %v2224_v59 = vld [vmem:[#allocation4 + $0xb0] sm:$0xff]  ;;  %v2230_v2 = vld [vmem:[#allocation4 + $0x80] sm:$0xff] }
 0x2a7   :  { %1388 = vtanh.f32 %v705_v1 }
 0x2ad   :  { %v1389_v4 = vpop.eup %1388 }
 0x2ae   :  { %v708_v8 = vmul.f32 %v1389_v4, %v707_v3  ;;  %v2233_v3 = vld [vmem:[#allocation4 + $0x68] sm:$0xff] }
 0x2b0   :  { %v2117_v9 = vadd.f32 %v709_v6, %v708_v8  ;;  %v2236_v6 = vld [vmem:[#allocation4 + $0x50] sm:$0xff] }
 0x2b2   :  { %792 = vmatmul.f32.vlgmr.msra.gmra.mxu3 %v2117_v9  ;;  %812 = vmatmul.f32.vlgmr.msrb.gmra.mxu0 %v2117_v9 }
 0x2b3   :  { %832 = vmatmul.f32.vlgmr.msrb.gmra.mxu1 %v2117_v9  ;;  %1100 = vmatpush.msra.mxu3 %v2122_v10 }
 0x2b4   :  { %1034 = vmatpush.msrb.mxu1 %v2125_v12  ;;  %1156 = vmatpush.msrb.mxu0 %v1416_v5 }
 0x2b5   :  { %1101 = vmatpush.msra.mxu3 %v2128_v7 }
 0x2b6   :  { %1035 = vmatpush.msrb.mxu1 %v2131_v13  ;;  %1157 = vmatpush.msrb.mxu0 %v1419_v15 }
 0x2b7   :  { %1102 = vmatpush.msra.mxu3 %v1652_v18  ;;  %v1345_v18 = vld [vmem:[%s2367_s0 + $0xa] sm:$0x3] }
 0x2b8   :  { %1346 = vmatmul.msk.f32.vlgmr.msrb.gmra.mxu2 %vm89_vm0, %v1345_v18 }
 0x2b9   :  { %1103 = vmatpush.msra.mxu3 %v1661_v21  ;;  %912 = vmatpush.msrb.mxu2 %v1684_v28  ;;  %v733_v21 = vpop.f32.mrf.mxu3  ;;  %v2168_v28 = vld [vmem:[#allocation4 + $0x108] sm:$0xff] }
 0x2ba   :  { %v734_v26 = vadd.f32 %v733_v21, %v2462_v35 }
 0x2bb   :  { %1104 = vmatpush.msra.mxu3 %v1677_v25  ;;  %913 = vmatpush.msrb.mxu2 %v1690_v30  ;;  %v2155_v25 = vld [vmem:[#allocation4 + $0x168] sm:$0xff] }
 0x2bd   :  { %1105 = vmatpush.msra.mxu3 %v1688_v29  ;;  %v2158_v29 = vld [vmem:[#allocation4 + $0x150] sm:$0xff] }
 0x2bf   :  { %1106 = vmatpush.msra.mxu3 %v1700_v33  ;;  %v2161_v33 = vld [vmem:[#allocation4 + $0x138] sm:$0xff] }
 0x2c0   :  { %1347 = vmatmul.msk.f32.vlgmr.msra.gmra.mxu2 %vm89_vm0, %v1345_v18 }
 0x2c1   :  { %1107 = vmatpush.msra.mxu3 %v1710_v36  ;;  %918 = vmatpush.msra.mxu2 %v2155_v25  ;;  %v2164_v36 = vld [vmem:[#allocation4 + $0x120] sm:$0xff]  ;;  %v753_v30 = vpop.f32.mrf.mxu3 }
 0x2c2   :  { %v754_v19 = vadd.f32 %v753_v30, %v2464_v50  ;;  %v2245_v30 = vld [vmem:[#allocation4 + $0x20] sm:$0xff] }
 0x2c3   :  { %1108 = vmatpush.msra.mxu3 %v1721_v39  ;;  %919 = vmatpush.msra.mxu2 %v2158_v29  ;;  %v2171_v39 = vld [vmem:[#allocation4 + $0xf0] sm:$0xff] }
 0x2c5   :  { %1109 = vmatpush.msra.mxu3 %v1731_v42  ;;  %920 = vmatpush.msra.mxu2 %v2161_v33  ;;  %v2174_v42 = vld [vmem:[#allocation4 + $0xd8] sm:$0xff] }
 0x2c7   :  { %1110 = vmatpush.msra.mxu3 %v1741_v45  ;;  %921 = vmatpush.msra.mxu2 %v2164_v36  ;;  %v2177_v45 = vld [vmem:[#allocation4 + $0xc0] sm:$0xff] }
 0x2c8   :  { %1348 = vmatmul.msk.f32.vlgmr.msrb.gmra.mxu2 %vm89_vm0, %v1345_v18  ;;  %v2240_v18 = vld [vmem:[#allocation4 + $0x38] sm:$0xff] }
 0x2c9   :  { %1111 = vmatpush.msra.mxu3 %v1756_v49  ;;  %922 = vmatpush.msra.mxu2 %v2168_v28  ;;  %v2180_v49 = vld [vmem:[#allocation4 + $0xa8] sm:$0xff] }
 0x2cb   :  { %1112 = vmatpush.msra.mxu3 %v1765_v51  ;;  %923 = vmatpush.msra.mxu2 %v2171_v39  ;;  %v773_v51 = vpop.f32.mrf.mxu3 }
 0x2cc   :  { %v774_v61 = vadd.f32 %v773_v51, %v1897_v20  ;;  %v2251_v51 = vld [vmem:[#allocation4 + $0x8] sm:$0xff] }
 0x2cd   :  { %1113 = vmatpush.msra.mxu3 %v1773_v54  ;;  %924 = vmatpush.msra.mxu2 %v2174_v42  ;;  %v2183_v54 = vld [vmem:[#allocation4 + $0x90] sm:$0xff] }
 0x2cf   :  { %1114 = vmatpush.msra.mxu3 %v1778_v55  ;;  %925 = vmatpush.msra.mxu2 %v2177_v45  ;;  %v2186_v55 = vld [vmem:[#allocation4 + $0x78] sm:$0xff] }
 0x2d1   :  { %1115 = vmatpush.msra.mxu3 %v1782_v56  ;;  %926 = vmatpush.msra.mxu2 %v2180_v49 }
 0x2d3   :  { %927 = vmatpush.msra.mxu2 %v2183_v54 }
 0x2d5   :  { %928 = vmatpush.msra.mxu2 %v2186_v55 }
 0x2d7   :  { %929 = vmatpush.msra.mxu2 %v1702_v34 }
 0x2d9   :  { %930 = vmatpush.msra.mxu2 %v1712_v37 }
 0x2db   :  { %931 = vmatpush.msra.mxu2 %v1723_v40 }
 0x2dd   :  { %932 = vmatpush.msra.mxu2 %v1733_v43  ;;  %v2204_v43 = vld [vmem:[#allocation4 + $0x140] sm:$0xff] }
 0x2df   :  { %933 = vmatpush.msra.mxu2 %v1748_v47  ;;  %v2210_v47 = vld [vmem:[#allocation4 + $0x110] sm:$0xff] }
 0x2e1   :  { %1080 = vmatpush.msrb.mxu2 %v2198_v52 }
 0x2e3   :  { %1081 = vmatpush.msrb.mxu2 %v2201_v57 }
 0x2e5   :  { %1082 = vmatpush.msrb.mxu2 %v2204_v43 }
 0x2e7   :  { %1083 = vmatpush.msrb.mxu2 %v2207_v48 }
 0x2e9   :  { %1084 = vmatpush.msrb.mxu2 %v2210_v47 }
 0x2eb   :  { %1085 = vmatpush.msrb.mxu2 %v2213_v44 }
 0x2ed   :  { %1086 = vmatpush.msrb.mxu2 %v2216_v38 }
 0x2ef   :  { %1087 = vmatpush.msrb.mxu2 %v2220_v62 }
 0x2f1   :  { %1088 = vmatpush.msrb.mxu2 %v2224_v59 }
 0x2f3   :  { %1089 = vmatpush.msrb.mxu2 %v2227_v0 }
 0x2f5   :  { %1090 = vmatpush.msrb.mxu2 %v2230_v2 }
 0x2f7   :  { %1091 = vmatpush.msrb.mxu2 %v2233_v3 }
 0x2f9   :  { %1092 = vmatpush.msrb.mxu2 %v2236_v6 }
 0x2fb   :  { %1093 = vmatpush.msrb.mxu2 %v2240_v18 }
 0x2fd   :  { %1094 = vmatpush.msrb.mxu2 %v2245_v30 }
 0x2ff   :  { %1095 = vmatpush.msrb.mxu2 %v2251_v51 }
 0x32f   :  { %v813_v56 = vpop.f32.mrf.mxu0 }
 0x330   :  { %v814_v16 = vadd.f32 %v813_v56, %v2465_v14  ;;  %v833_v22 = vpop.f32.mrf.mxu1  ;;  %v1448_v56 = vld [vmem:[#allocation4 + $0x130] sm:$0xff] }
 0x331   :  { %v834_v60 = vadd.f32 %v833_v22, %v2466_v53  ;;  %v2265_v22 = vld [vmem:[#allocation2 + $0x10] sm:$0xff] }
 0x332   :  { %v837_v41 = vadd.f32 %v814_v16, %v754_v19  ;;  %v1449_v16 = vld [vmem:[#allocation4 + $0x118] sm:$0xff]  ;;  %v1450_v19 = vld [vmem:[#allocation4 + $0x100] sm:$0xff] }
 0x334   :  { %v839_v40 = vmul.f32 0.5, %v837_v41  ;;  %v1458_v41 = vld [vmem:[#allocation4 + $0x40] sm:$0xff] }
 0x335   :  { %v793_v23 = vpop.f32.mrf.mxu3 }
 0x336   :  { %v794_v31 = vadd.f32 %v793_v23, %v2463_v24  ;;  %v1451_v23 = vld [vmem:[#allocation4 + $0xe8] sm:$0xff] }
 0x338   :  { %v836_v34 = vadd.f32 %v794_v31, %v734_v26  ;;  %v1452_v26 = vld [vmem:[#allocation4 + $0xd0] sm:$0xff]  ;;  %v1453_v31 = vld [vmem:[#allocation4 + $0xb8] sm:$0xff] }
 0x33a   :  { %v838_v37 = vmul.f32 0.5, %v836_v34  ;;  %v1459_v34 = vld [vmem:[#allocation4 + $0x28] sm:$0xff] }
 0x33c   :  { %1390 = vtanh.f32 %v838_v37  ;;  %v1460_v37 = vld [vmem:[#allocation4 + $0x10] sm:$0xff] }
 0x33d   :  { %1392 = vtanh.f32 %v839_v40  ;;  %v1349_v40 = vld [vmem:[%s2367_s0 + $0xc] sm:$0x3] }
 0x33e   :  { %1350 = vmatmul.msk.f32.vlgmr.msra.gmra.mxu1 %vm89_vm0, %v1349_v40 }
 0x342   :  { %v1391_v63 = vpop.eup %1390 }
 0x343   :  { %v842_v58 = vmul.f32 0.5, %v1391_v63  ;;  %v1393_v46 = vpop.eup %1392  ;;  %v2262_v63 = vld [vmem:[#allocation2 + $0x28] sm:$0xff] }
 0x344   :  { %v843_v32 = vmul.f32 0.5, %v1393_v46  ;;  %1054 = vmatpush.msra.mxu1 %v2262_v63 }
 0x345   :  { %v844_v27 = vadd.f32 0.5, %v842_v58  ;;  %v875_v58 = vpop.f32.mrf.mxu2 }
 0x346   :  { %v845_v1 = vadd.f32 0.5, %v843_v32  ;;  %1055 = vmatpush.msra.mxu1 %v2265_v22 }
 0x347   :  { %v846_v17 = vmul.f32 %v844_v27, %v834_v60  ;;  %1351 = vmatmul.msk.f32.vlgmr.msrb.gmra.mxu1 %vm89_vm0, %v1349_v40  ;;  %v2281_v27 = vld [vmem:[#allocation4 + $0x60] sm:$0xff] }
 0x348   :  { %v849_v4 = vsub.f32 1.0, %v845_v1  ;;  %v851_v5 = vmul.f32 %v845_v1, %v2117_v9  ;;  %v1447_v9 = vld [vmem:[#allocation4 + $0x148] sm:$0xff]  ;;  %1060 = vmatpush.msrb.mxu1 %v2155_v25  ;;  %v2290_v1 = vld [vmem:[#allocation4 + $0x18] sm:$0xff] }
 0x349   :  { %v847_v11 = vadd.f32 %v846_v17, %v774_v61  ;;  %v2284_v61 = vld [vmem:[#allocation4 + $0x48] sm:$0xff]  ;;  %v2287_v17 = vld [vmem:[#allocation4 + $0x30] sm:$0xff] }
 0x34a   :  { %1061 = vmatpush.msrb.mxu1 %v2158_v29 }
 0x34b   :  { %1394 = vtanh.f32 %v847_v11 }
 0x34c   :  { %1062 = vmatpush.msrb.mxu1 %v2161_v33 }
 0x34d   :  { %v895_v46 = vpop.f32.mrf.mxu2 }
 0x34e   :  { %1063 = vmatpush.msrb.mxu1 %v2164_v36 }
 0x34f   :  { %1352 = vmatmul.msk.f32.vlgmr.msra.gmra.mxu1 %vm89_vm0, %v1349_v40 }
 0x350   :  { %1064 = vmatpush.msrb.mxu1 %v2168_v28 }
 0x351   :  { %v1395_v8 = vpop.eup %1394 }
 0x352   :  { %v850_v15 = vmul.f32 %v1395_v8, %v849_v4  ;;  %1065 = vmatpush.msrb.mxu1 %v2171_v39  ;;  %v876_v4 = vadd.f32 %v875_v58, %v2462_v35  ;;  %v896_v8 = vadd.f32 %v895_v46, %v2464_v50 }
 0x354   :  { %v2243_v21 = vadd.f32 %v851_v5, %v850_v15  ;;  %1066 = vmatpush.msrb.mxu1 %v2174_v42 }
 0x355   :  { %v915_v60 = vpop.f32.mrf.mxu2 }
 0x356   :  { %934 = vmatmul.f32.vlgmr.msra.gmra.mxu2 %v2243_v21  ;;  %954 = vmatmul.f32.vlgmr.msrb.gmra.mxu3 %v2243_v21 }
 0x357   :  { %974 = vmatmul.f32.vlgmr.msra.gmra.mxu0 %v2243_v21  ;;  %1242 = vmatpush.msra.mxu2 %v2122_v10  ;;  %v1455_v10 = vld [vmem:[#allocation4 + $0x88] sm:$0xff] }
 0x358   :  { %1176 = vmatpush.msra.mxu0 %v2125_v12  ;;  %v1454_v12 = vld [vmem:[#allocation4 + $0xa0] sm:$0xff]  ;;  %1067 = vmatpush.msrb.mxu1 %v2177_v45 }
 0x359   :  { %1243 = vmatpush.msra.mxu2 %v2128_v7  ;;  %v1457_v7 = vld [vmem:[#allocation4 + $0x58] sm:$0xff] }
 0x35a   :  { %1177 = vmatpush.msra.mxu0 %v2131_v13  ;;  %v1456_v13 = vld [vmem:[#allocation4 + $0x70] sm:$0xff]  ;;  %1068 = vmatpush.msrb.mxu1 %v2180_v49 }
 0x35b   :  { %1244 = vmatpush.msra.mxu2 %v1447_v9  ;;  %v2297_v9 = vld [vmem:[#allocation4] sm:$0xff] }
 0x35c   :  { %1069 = vmatpush.msrb.mxu1 %v2183_v54 }
 0x35d   :  { %1245 = vmatpush.msra.mxu2 %v1448_v56 }
 0x35e   :  { %1070 = vmatpush.msrb.mxu1 %v2186_v55 }
 0x35f   :  { %1246 = vmatpush.msra.mxu2 %v1449_v16 }
 0x360   :  { %1071 = vmatpush.msrb.mxu1 %v2281_v27 }
 0x361   :  { %1247 = vmatpush.msra.mxu2 %v1450_v19 }
 0x362   :  { %1072 = vmatpush.msrb.mxu1 %v2284_v61 }
 0x363   :  { %1248 = vmatpush.msra.mxu2 %v1451_v23 }
 0x364   :  { %1073 = vmatpush.msrb.mxu1 %v2287_v17 }
 0x365   :  { %1249 = vmatpush.msra.mxu2 %v1452_v26 }
 0x366   :  { %1074 = vmatpush.msrb.mxu1 %v2290_v1 }
 0x367   :  { %1250 = vmatpush.msra.mxu2 %v1453_v31 }
 0x368   :  { %1075 = vmatpush.msrb.mxu1 %v2297_v9 }
 0x369   :  { %1251 = vmatpush.msra.mxu2 %v1454_v12 }
 0x36a   :  { %1222 = vmatpush.msra.mxu1 %v2198_v52 }
 0x36b   :  { %1252 = vmatpush.msra.mxu2 %v1455_v10 }
 0x36c   :  { %1223 = vmatpush.msra.mxu1 %v2201_v57 }
 0x36d   :  { %1253 = vmatpush.msra.mxu2 %v1456_v13 }
 0x36e   :  { %1224 = vmatpush.msra.mxu1 %v2204_v43  ;;  %v916_v43 = vadd.f32 %v915_v60, %v1897_v20 }
 0x36f   :  { %1254 = vmatpush.msra.mxu2 %v1457_v7 }
 0x370   :  { %1225 = vmatpush.msra.mxu1 %v2207_v48 }
 0x371   :  { %1255 = vmatpush.msra.mxu2 %v1458_v41 }
 0x372   :  { %1226 = vmatpush.msra.mxu1 %v2210_v47 }
 0x373   :  { %1256 = vmatpush.msra.mxu2 %v1459_v34 }
 0x374   :  { %1227 = vmatpush.msra.mxu1 %v2213_v44 }
 0x375   :  { %1257 = vmatpush.msra.mxu2 %v1460_v37 }
 0x376   :  { %1228 = vmatpush.msra.mxu1 %v2216_v38 }
 0x378   :  { %1229 = vmatpush.msra.mxu1 %v2220_v62 }
 0x37a   :  { %1230 = vmatpush.msra.mxu1 %v2224_v59  ;;  %v1353_v59 = vld [vmem:[%s2367_s0 + $0xe] sm:$0x3] }
 0x37b   :  { %1354 = vmatmul.msk.f32.vlgmr.msrb.gmra.mxu0 %vm89_vm0, %v1353_v59 }
 0x37c   :  { %1231 = vmatpush.msra.mxu1 %v2227_v0  ;;  %1196 = vmatpush.msrb.mxu0 %v2262_v63 }
 0x37e   :  { %1232 = vmatpush.msra.mxu1 %v2230_v2  ;;  %1197 = vmatpush.msrb.mxu0 %v2265_v22 }
 0x380   :  { %1233 = vmatpush.msra.mxu1 %v2233_v3 }
 0x382   :  { %1234 = vmatpush.msra.mxu1 %v2236_v6 }
 0x383   :  { %1355 = vmatmul.msk.f32.vlgmr.msra.gmra.mxu0 %vm89_vm0, %v1353_v59 }
 0x384   :  { %1235 = vmatpush.msra.mxu1 %v2240_v18  ;;  %1202 = vmatpush.msra.mxu0 %v2155_v25 }
 0x386   :  { %1236 = vmatpush.msra.mxu1 %v2245_v30  ;;  %1203 = vmatpush.msra.mxu0 %v2158_v29 }
 0x388   :  { %1237 = vmatpush.msra.mxu1 %v2251_v51  ;;  %1204 = vmatpush.msra.mxu0 %v2161_v33 }
 0x38a   :  { %1205 = vmatpush.msra.mxu0 %v2164_v36 }
 0x38b   :  { %1356 = vmatmul.msk.f32.vlgmr.msrb.gmra.mxu0 %vm89_vm0, %v1353_v59 }
 0x38c   :  { %1206 = vmatpush.msra.mxu0 %v2168_v28 }
 0x38e   :  { %1207 = vmatpush.msra.mxu0 %v2171_v39 }
 0x390   :  { %1208 = vmatpush.msra.mxu0 %v2174_v42 }
 0x392   :  { %1209 = vmatpush.msra.mxu0 %v2177_v45 }
 0x394   :  { %1210 = vmatpush.msra.mxu0 %v2180_v49 }
 0x396   :  { %1211 = vmatpush.msra.mxu0 %v2183_v54 }
 0x398   :  { %1212 = vmatpush.msra.mxu0 %v2186_v55 }
 0x39a   :  { %1213 = vmatpush.msra.mxu0 %v2281_v27 }
 0x39c   :  { %1214 = vmatpush.msra.mxu0 %v2284_v61 }
 0x39e   :  { %1215 = vmatpush.msra.mxu0 %v2287_v17 }
 0x3a0   :  { %1216 = vmatpush.msra.mxu0 %v2290_v1  ;;  %v1293_v1 = vld [vmem:[#allocation6 + $0x70] sm:$0xff] }
 0x3a2   :  { %1217 = vmatpush.msra.mxu0 %v2297_v9 }
 0x3bb   :  { %v1017_v25 = vpop.f32.mrf.mxu1 }
 0x3bc   :  { %v1018_v28 = vadd.f32 %v1017_v25, %v2462_v35 }
 0x3c4   :  { %v1037_v29 = vpop.f32.mrf.mxu1 }
 0x3c5   :  { %v1038_v54 = vadd.f32 %v1037_v29, %v2464_v50 }
 0x3cc   :  { %v1057_v33 = vpop.f32.mrf.mxu1 }
 0x3cd   :  { %v1058_v51 = vadd.f32 %v1057_v33, %v1897_v20 }
 0x3d4   :  { %v975_v31 = vpop.f32.mrf.mxu0 }
 0x3d5   :  { %v976_v10 = vadd.f32 %v975_v31, %v2466_v53  ;;  %v1284_v31 = vld [vmem:[#allocation6 + $0x28] sm:$0xff] }
 0x3d9   :  { %v935_v32 = vpop.f32.mrf.mxu2  ;;  %v955_v11 = vpop.f32.mrf.mxu3 }
 0x3da   :  { %v936_v5 = vadd.f32 %v935_v32, %v2463_v24  ;;  %v956_v15 = vadd.f32 %v955_v11, %v2465_v14  ;;  %v1294_v32 = vld [vmem:[#allocation6 + $0x78] sm:$0xff] }
 0x3db   :  { %1299 = vmatpush.msrb.mxu3 %v1294_v32 }
 0x3dc   :  { %v978_v56 = vadd.f32 %v936_v5, %v876_v4  ;;  %v979_v16 = vadd.f32 %v956_v15, %v896_v8  ;;  %v1292_v4 = vld [vmem:[#allocation6 + $0x68] sm:$0xff]  ;;  %v1291_v8 = vld [vmem:[#allocation6 + $0x60] sm:$0xff]  ;;  %v1290_v5 = vld [vmem:[#allocation6 + $0x58] sm:$0xff] }
 0x3dd   :  { %1300 = vmatpush.msrb.mxu3 %v1293_v1  ;;  %v1289_v15 = vld [vmem:[#allocation6 + $0x50] sm:$0xff] }
 0x3de   :  { %v980_v19 = vmul.f32 0.5, %v978_v56  ;;  %v981_v23 = vmul.f32 0.5, %v979_v16  ;;  %v1288_v56 = vld [vmem:[#allocation6 + $0x48] sm:$0xff]  ;;  %v1287_v16 = vld [vmem:[#allocation6 + $0x40] sm:$0xff] }
 0x3df   :  { %1301 = vmatpush.msrb.mxu3 %v1292_v4 }
 0x3e0   :  { %1396 = vtanh.f32 %v980_v19  ;;  %v1286_v19 = vld [vmem:[#allocation6 + $0x38] sm:$0xff] }
 0x3e1   :  { %1398 = vtanh.f32 %v981_v23  ;;  %1302 = vmatpush.msrb.mxu3 %v1291_v8  ;;  %v1285_v23 = vld [vmem:[#allocation6 + $0x30] sm:$0xff] }
 0x3e3   :  { %1303 = vmatpush.msrb.mxu3 %v1290_v5 }
 0x3e5   :  { %1304 = vmatpush.msrb.mxu3 %v1289_v15 }
 0x3e6   :  { %v1397_v26 = vpop.eup %1396 }
 0x3e7   :  { %v984_v12 = vmul.f32 0.5, %v1397_v26  ;;  %v1399_v52 = vpop.eup %1398  ;;  %1305 = vmatpush.msrb.mxu3 %v1288_v56 }
 0x3e8   :  { %v985_v48 = vmul.f32 0.5, %v1399_v52  ;;  %v1282_v52 = vld [vmem:[#allocation6 + $0x18] sm:$0xff] }
 0x3e9   :  { %v986_v57 = vadd.f32 0.5, %v984_v12  ;;  %1306 = vmatpush.msrb.mxu3 %v1287_v16  ;;  %v1283_v12 = vld [vmem:[#allocation6 + $0x20] sm:$0xff] }
 0x3ea   :  { %v987_v44 = vadd.f32 0.5, %v985_v48 }
 0x3eb   :  { %v988_v13 = vmul.f32 %v986_v57, %v976_v10  ;;  %1307 = vmatpush.msrb.mxu3 %v1286_v19  ;;  %v1281_v10 = vld [vmem:[#allocation6 + $0x10] sm:$0xff]  ;;  %v1280_v57 = vld [vmem:[#allocation6 + $0x8] sm:$0xff] }
 0x3ec   :  { %v991_v38 = vsub.f32 1.0, %v987_v44  ;;  %v993_v62 = vmul.f32 %v987_v44, %v2243_v21 }
 0x3ed   :  { %v989_v47 = vadd.f32 %v988_v13, %v916_v43  ;;  %1308 = vmatpush.msrb.mxu3 %v1285_v23  ;;  %v1279_v43 = vld [vmem:[#allocation6] sm:$0xff] }
 0x3ef   :  { %1400 = vtanh.f32 %v989_v47  ;;  %1309 = vmatpush.msrb.mxu3 %v1284_v31 }
 0x3f1   :  { %1310 = vmatpush.msrb.mxu3 %v1283_v12 }
 0x3f3   :  { %1311 = vmatpush.msrb.mxu3 %v1282_v52 }
 0x3f5   :  { %v1401_v7 = vpop.eup %1400  ;;  %1312 = vmatpush.msrb.mxu3 %v1281_v10 }
 0x3f6   :  { %v992_v41 = vmul.f32 %v1401_v7, %v991_v38 }
 0x3f7   :  { %1313 = vmatpush.msrb.mxu3 %v1280_v57 }
 0x3f8   :  { %v994_v34 = vadd.f32 %v993_v62, %v992_v41  ;;  %v1159_v11 = vpop.f32.mrf.mxu0 }
 0x3f9   :  { %v1160_v47 = vadd.f32 %v1159_v11, %v2462_v35  ;;  %1314 = vmatpush.msrb.mxu3 %v1279_v43 }
 0x3fa   :  { %1076 = vmatmul.f32.vlgmr.msrb.gmra.mxu1 %v994_v34  ;;  %1096 = vmatmul.f32.vlgmr.msrb.gmra.mxu2 %v994_v34 }
 0x3fb   :  { %1116 = vmatmul.f32.vlgmr.msra.gmra.mxu3 %v994_v34 }
 0x400   :  { %v1179_v9 = vpop.f32.mrf.mxu0 }
 0x401   :  { %v1180_v44 = vadd.f32 %v1179_v9, %v2464_v50 }
 0x408   :  { %v1199_v26 = vpop.f32.mrf.mxu0 }
 0x409   :  { %v1200_v50 = vadd.f32 %v1199_v26, %v1897_v20 }
 0x477   :  { %v1077_v36 = vpop.f32.mrf.mxu1 }
 0x478   :  { %v1078_v39 = vadd.f32 %v1077_v36, %v2463_v24 }
 0x47a   :  { %v1120_v42 = vadd.f32 %v1078_v39, %v1018_v28 }
 0x47c   :  { %v1122_v45 = vmul.f32 0.5, %v1120_v42 }
 0x47d   :  { %v1097_v49 = vpop.f32.mrf.mxu2 }
 0x47e   :  { %1402 = vtanh.f32 %v1122_v45  ;;  %v1098_v55 = vadd.f32 %v1097_v49, %v2465_v14  ;;  %v1117_v6 = vpop.f32.mrf.mxu3 }
 0x47f   :  { %v1118_v21 = vadd.f32 %v1117_v6, %v2466_v53 }
 0x480   :  { %v1121_v0 = vadd.f32 %v1098_v55, %v1038_v54 }
 0x482   :  { %v1123_v2 = vmul.f32 0.5, %v1121_v0 }
 0x484   :  { %v1403_v3 = vpop.eup %1402  ;;  %1404 = vtanh.f32 %v1123_v2  ;;  %v1365_v2 = vld [vmem:[%s2373_s6] ss:$0 sm:$0xff] }
 0x485   :  { %v1126_v18 = vmul.f32 0.5, %v1403_v3 }
 0x487   :  { %v1128_v30 = vadd.f32 0.5, %v1126_v18 }
 0x489   :  { %v1130_v37 = vmul.f32 %v1128_v30, %v1118_v21 }
 0x48a   :  { %v1405_v40 = vpop.eup %1404 }
 0x48b   :  { %v1127_v63 = vmul.f32 0.5, %v1405_v40  ;;  %v1131_v22 = vadd.f32 %v1130_v37, %v1058_v51 }
 0x48d   :  { %1406 = vtanh.f32 %v1131_v22  ;;  %v1129_v58 = vadd.f32 0.5, %v1127_v63 }
 0x48f   :  { %v1133_v46 = vsub.f32 1.0, %v1129_v58  ;;  %v1135_v27 = vmul.f32 %v1129_v58, %v994_v34 }
 0x493   :  { %v1407_v60 = vpop.eup %1406 }
 0x494   :  { %v1134_v61 = vmul.f32 %v1407_v60, %v1133_v46 }
 0x496   :  { %v2349_v17 = vadd.f32 %v1135_v27, %v1134_v61 }
 0x498   :  { %1218 = vmatmul.f32.vlgmr.msra.gmra.mxu0 %v2349_v17  ;;  %1238 = vmatmul.f32.vlgmr.msra.gmra.mxu1 %v2349_v17 }
 0x499   :  { %1258 = vmatmul.f32.vlgmr.msra.gmra.mxu2 %v2349_v17 }
 0x515   :  { %v1219_v13 = vpop.f32.mrf.mxu0  ;;  %v1239_v48 = vpop.f32.mrf.mxu1 }
 0x516   :  { %v1220_v38 = vadd.f32 %v1219_v13, %v2463_v24  ;;  %v1240_v7 = vadd.f32 %v1239_v48, %v2465_v14 }
 0x518   :  { %v1262_v62 = vadd.f32 %v1220_v38, %v1160_v47  ;;  %v1263_v41 = vadd.f32 %v1240_v7, %v1180_v44 }
 0x51a   :  { %v1264_v34 = vmul.f32 0.5, %v1262_v62  ;;  %v1265_v59 = vmul.f32 0.5, %v1263_v41 }
 0x51c   :  { %1408 = vtanh.f32 %v1264_v34  ;;  %v1259_v29 = vpop.f32.mrf.mxu2 }
 0x51d   :  { %1410 = vtanh.f32 %v1265_v59  ;;  %v1260_v28 = vadd.f32 %v1259_v29, %v2466_v53 }
 0x522   :  { %v1409_v25 = vpop.eup %1408 }
 0x523   :  { %v1268_v33 = vmul.f32 0.5, %v1409_v25  ;;  %v1411_v36 = vpop.eup %1410 }
 0x524   :  { %v1269_v24 = vmul.f32 0.5, %v1411_v36 }
 0x525   :  { %v1270_v35 = vadd.f32 0.5, %v1268_v33 }
 0x526   :  { %v1271_v14 = vadd.f32 0.5, %v1269_v24 }
 0x527   :  { %v1272_v39 = vmul.f32 %v1270_v35, %v1260_v28 }
 0x528   :  { %v1275_v45 = vsub.f32 1.0, %v1271_v14  ;;  %v1277_v54 = vmul.f32 %v1271_v14, %v2349_v17 }
 0x529   :  { %v1273_v42 = vadd.f32 %v1272_v39, %v1200_v50 }
 0x52b   :  { %1412 = vtanh.f32 %v1273_v42 }
 0x531   :  { %v1413_v49 = vpop.eup %1412 }
 0x532   :  { %v1276_v55 = vmul.f32 %v1413_v49, %v1275_v45 }
 0x534   :  { %v1278_v0 = vadd.f32 %v1277_v54, %v1276_v55 }
 0x536   :  { %1315 = vmatmul.f32.vlgmr.msrb.gmra.mxu3 %v1278_v0 }
 0x5b9   :  { %v1316_v53 = vpop.f32.mrf.mxu3 }
 0x5ba   :  { %v1317_v3 = vadd.f32 %v1365_v2, %v1316_v53 }
 0x5bc   :  { %1319 = vst [vmem:[%s2374_s7] sm:$0x3] %v1317_v3 }
 0x5bd   :  { %1324 = vsyncpa [#allocation3], 1 }
 0x5be   :  { %1325 = vsyncpa [#allocation5], 1 }

</bundles_post_ra>
